<compile_context>
chip_gen: v5e
topology: v5e:2x2
jax: 0.10.0
libtpu: 0.0.40
codegen_flags: <defaults>
</compile_context>

<pallas_src>
import functools

import jax
import jax.numpy as jnp
from jax import lax
from jax.experimental import pallas as pl
from jax.experimental.pallas import tpu as pltpu

_EPS = 1e-5  # BatchNorm eps (torch default)


# ----------------------------------------------------------------------------
# activations
# ----------------------------------------------------------------------------
def _apply_act(y, act):
    if act == "relu":        # ReLU6
        return jnp.clip(y, 0.0, 6.0)
    if act == "hswish":      # HardSwish: x * relu6(x + 3) / 6
        return y * jnp.clip(y + 3.0, 0.0, 6.0) * (1.0 / 6.0)
    return y                 # 'none'


# ----------------------------------------------------------------------------
# kernels
# ----------------------------------------------------------------------------
def _pw_kernel(x_ref, s_ref, w_ref, b_ref, o_ref, *, act):
    """Per-batch 1x1 conv (+ folded BN) + activation, with per-channel gating.

    x_ref: (1, HW, Cin)   s_ref: (1, 1, Cin)   w_ref: (Cin, Cout)
    b_ref: (1, Cout)      o_ref: (1, HW, Cout)
    """
    x = x_ref[0].astype(jnp.float32) * s_ref[0].astype(jnp.float32)
    y = jnp.dot(x, w_ref[...].astype(jnp.float32),
                preferred_element_type=jnp.float32)
    y = y + b_ref[...].astype(jnp.float32)
    o_ref[0] = _apply_act(y, act).astype(o_ref.dtype)


def _pw_res_kernel(x_ref, s_ref, xin_ref, wp_ref, bp_ref, ws_ref, bs_ref,
                   o_ref, *, act):
    """Point 1x1 conv + BN + act fused with SE gating, Conv1x1BN shortcut and
    the residual add (stride == 1 path).

    x_ref: (1, HW, Cmid)  s_ref: (1, 1, Cmid)  xin_ref: (1, HW, Cin)
    wp_ref: (Cmid, Cout)  bp_ref: (1, Cout)
    ws_ref: (Cin, Cout)   bs_ref: (1, Cout)    o_ref: (1, HW, Cout)
    """
    x = x_ref[0].astype(jnp.float32) * s_ref[0].astype(jnp.float32)
    y = jnp.dot(x, wp_ref[...].astype(jnp.float32),
                preferred_element_type=jnp.float32)
    y = _apply_act(y + bp_ref[...].astype(jnp.float32), act)

    sc = jnp.dot(xin_ref[0].astype(jnp.float32), ws_ref[...].astype(jnp.float32),
                 preferred_element_type=jnp.float32)
    sc = sc + bs_ref[...].astype(jnp.float32)     # Conv1x1BN shortcut: no act

    o_ref[0] = (y + sc).astype(o_ref.dtype)


def _dw_kernel(xp_ref, w_ref, b_ref, y_ref, pooled_ref, *, k, act):
    """Per-batch depthwise kxk conv (stride 1) + folded BN + activation, plus a
    fused global-average pool of the activated output (feeds the SE block).

    xp_ref: (1, Hp, Wp, C) padded input   w_ref: (k, k, C) (BN scale folded in)
    b_ref: (1, C)                          y_ref: (1, H, W, C)
    pooled_ref: (1, 1, C)
    """
    H, W, C = y_ref.shape[1], y_ref.shape[2], y_ref.shape[3]
    acc = jnp.zeros((H, W, C), jnp.float32)
    for dh in range(k):                       # k*k static taps on the VPU
        for dw in range(k):
            tap = xp_ref[0, dh:dh + H, dw:dw + W, :].astype(jnp.float32)
            wt = w_ref[dh, dw, :].astype(jnp.float32).reshape(1, 1, C)
            acc = acc + tap * wt
    y = _apply_act(acc + b_ref[...].astype(jnp.float32), act)
    y_ref[0] = y.astype(y_ref.dtype)
    pooled_ref[...] = jnp.mean(y, axis=(0, 1), keepdims=True)


def _se_mlp_kernel(p_ref, w1_ref, b1_ref, w2_ref, b2_ref, o_ref):
    """SE excitation MLP: Linear -> ReLU6 -> Linear -> HardSwish.

    p_ref: (N, C)  w1_ref: (C, Cse)  b1_ref: (1, Cse)
    w2_ref: (Cse, C)  b2_ref: (1, C)  o_ref: (N, C)
    """
    p = p_ref[...].astype(jnp.float32)
    h = jnp.dot(p, w1_ref[...].astype(jnp.float32),
                preferred_element_type=jnp.float32) + b1_ref[...].astype(jnp.float32)
    h = jnp.clip(h, 0.0, 6.0)                                 # ReLU6
    s = jnp.dot(h, w2_ref[...].astype(jnp.float32),
                preferred_element_type=jnp.float32) + b2_ref[...].astype(jnp.float32)
    s = s * jnp.clip(s + 3.0, 0.0, 6.0) * (1.0 / 6.0)         # HardSwish
    o_ref[...] = s.astype(o_ref.dtype)


# ----------------------------------------------------------------------------
# pallas_call wrappers
# ----------------------------------------------------------------------------
def _pw_conv(x_rows, scale3, w, b, *, act):
    N, HW, Cin = x_rows.shape
    Cout = w.shape[1]
    return pl.pallas_call(
        functools.partial(_pw_kernel, act=act),
        out_shape=jax.ShapeDtypeStruct((N, HW, Cout), x_rows.dtype),
        grid_spec=pltpu.PrefetchScalarGridSpec(
            num_scalar_prefetch=0,
            grid=(N,),
            in_specs=[
                pl.BlockSpec((1, HW, Cin), lambda n: (n, 0, 0)),
                pl.BlockSpec((1, 1, Cin), lambda n: (n, 0, 0)),
                pl.BlockSpec((Cin, Cout), lambda n: (0, 0)),
                pl.BlockSpec((1, Cout), lambda n: (0, 0)),
            ],
            out_specs=pl.BlockSpec((1, HW, Cout), lambda n: (n, 0, 0)),
        ),
        compiler_params=pltpu.CompilerParams(dimension_semantics=("parallel",)),
    )(x_rows, scale3, w, b.reshape(1, Cout))


def _pw_conv_res(x_rows, scale3, xin_rows, wp, bp, ws, bs, *, act):
    N, HW, Cmid = x_rows.shape
    Cin = xin_rows.shape[2]
    Cout = wp.shape[1]
    return pl.pallas_call(
        functools.partial(_pw_res_kernel, act=act),
        out_shape=jax.ShapeDtypeStruct((N, HW, Cout), x_rows.dtype),
        grid_spec=pltpu.PrefetchScalarGridSpec(
            num_scalar_prefetch=0,
            grid=(N,),
            in_specs=[
                pl.BlockSpec((1, HW, Cmid), lambda n: (n, 0, 0)),
                pl.BlockSpec((1, 1, Cmid), lambda n: (n, 0, 0)),
                pl.BlockSpec((1, HW, Cin), lambda n: (n, 0, 0)),
                pl.BlockSpec((Cmid, Cout), lambda n: (0, 0)),
                pl.BlockSpec((1, Cout), lambda n: (0, 0)),
                pl.BlockSpec((Cin, Cout), lambda n: (0, 0)),
                pl.BlockSpec((1, Cout), lambda n: (0, 0)),
            ],
            out_specs=pl.BlockSpec((1, HW, Cout), lambda n: (n, 0, 0)),
        ),
        compiler_params=pltpu.CompilerParams(dimension_semantics=("parallel",)),
    )(x_rows, scale3, xin_rows, wp, bp.reshape(1, Cout), ws, bs.reshape(1, Cout))


def _dw_conv(x_pad, w, b, *, k, act):
    N, Hp, Wp, C = x_pad.shape
    H, W = Hp - (k - 1), Wp - (k - 1)
    return pl.pallas_call(
        functools.partial(_dw_kernel, k=k, act=act),
        out_shape=(jax.ShapeDtypeStruct((N, H, W, C), x_pad.dtype),
                   jax.ShapeDtypeStruct((N, 1, C), jnp.float32)),
        grid_spec=pltpu.PrefetchScalarGridSpec(
            num_scalar_prefetch=0,
            grid=(N,),
            in_specs=[
                pl.BlockSpec((1, Hp, Wp, C), lambda n: (n, 0, 0, 0)),
                pl.BlockSpec((k, k, C), lambda n: (0, 0, 0)),
                pl.BlockSpec((1, C), lambda n: (0, 0)),
            ],
            out_specs=(pl.BlockSpec((1, H, W, C), lambda n: (n, 0, 0, 0)),
                       pl.BlockSpec((1, 1, C), lambda n: (n, 0, 0))),
        ),
        compiler_params=pltpu.CompilerParams(dimension_semantics=("parallel",)),
    )(x_pad, w, b.reshape(1, C))


def _se_mlp(pooled, se):
    N, C = pooled.shape
    Cse = se["w1"].shape[1]
    return pl.pallas_call(
        _se_mlp_kernel,
        out_shape=jax.ShapeDtypeStruct((N, C), jnp.float32),
        grid_spec=pltpu.PrefetchScalarGridSpec(
            num_scalar_prefetch=0,
            grid=(1,),
            in_specs=[
                pl.BlockSpec((N, C), lambda i: (0, 0)),
                pl.BlockSpec((C, Cse), lambda i: (0, 0)),
                pl.BlockSpec((1, Cse), lambda i: (0, 0)),
                pl.BlockSpec((Cse, C), lambda i: (0, 0)),
                pl.BlockSpec((1, C), lambda i: (0, 0)),
            ],
            out_specs=pl.BlockSpec((N, C), lambda i: (0, 0)),
        ),
        compiler_params=pltpu.CompilerParams(dimension_semantics=("arbitrary",)),
    )(pooled, se["w1"], se["b1"].reshape(1, Cse), se["w2"], se["b2"].reshape(1, C))


# ----------------------------------------------------------------------------
# BatchNorm folding (inference mode)
# ----------------------------------------------------------------------------
# TODO(synk): BatchNorm is applied in inference mode (running stats folded into
# the conv weights/bias); training-mode batch statistics are not implemented.
def _fold_bn_pw(p):
    g = p["bn"]["gamma"] / jnp.sqrt(p["bn"]["var"] + _EPS)
    return p["w"] * g[None, :], (p["b"] - p["bn"]["mean"]) * g + p["bn"]["beta"]


def _fold_bn_dw(p):
    g = p["bn"]["gamma"] / jnp.sqrt(p["bn"]["var"] + _EPS)
    return p["w"] * g[None, None, :], (p["b"] - p["bn"]["mean"]) * g + p["bn"]["beta"]


# ----------------------------------------------------------------------------
# full forward (Pallas path)
# ----------------------------------------------------------------------------
def se_inverted_bottleneck(params, x, *, kernel_size, stride, activate, use_se):
    """x: (N, Cin, H, W) NCHW -> (N, Cout, Ho, Wo) NCHW."""
    N, Cin, H, W = x.shape
    x_nhwc = jnp.transpose(x, (0, 2, 3, 1))
    x_rows = x_nhwc.reshape(N, H * W, Cin)

    # 1) expansion 1x1 conv + BN + act
    w_exp, b_exp = _fold_bn_pw(params["exp"])
    Cmid = w_exp.shape[1]
    ones = jnp.ones((N, 1, Cin), x_rows.dtype)
    mid_rows = _pw_conv(x_rows, ones, w_exp, b_exp, act=activate)

    # 2) depthwise conv + BN + act (+ fused global average pool for SE)
    p = (kernel_size - 1) // 2
    mid_img = mid_rows.reshape(N, H, W, Cmid)
    mid_pad = jnp.pad(mid_img, ((0, 0), (p, p), (p, p), (0, 0)))
    w_dw, b_dw = _fold_bn_dw(params["dw"])
    y_dw, pooled = _dw_conv(mid_pad, w_dw, b_dw, k=kernel_size, act=activate)
    if stride > 1:
        # TODO(synk): stride>1 depthwise conv is done as stride-1 conv +
        # subsampling in the wrapper (numerically exact, but extra work).
        y_dw = y_dw[:, ::stride, ::stride, :]
    Ho, Wo = y_dw.shape[1], y_dw.shape[2]
    y_rows = y_dw.reshape(N, Ho * Wo, Cmid)

    # 3) squeeze-and-excite gate
    # TODO(synk): AvgPool2d(se_kernel_size) is implemented as a global average
    # pool (the torch module is only shape-consistent when se_kernel_size
    # equals the post-depthwise spatial size).
    if use_se:
        if stride > 1:
            pooled_nc = jnp.mean(y_rows, axis=1)
        else:
            pooled_nc = pooled.reshape(N, Cmid)
        scale = _se_mlp(pooled_nc, params["se"])           # (N, Cmid)
    else:
        scale = jnp.ones((N, Cmid), x_rows.dtype)
    scale3 = scale.reshape(N, 1, Cmid).astype(x_rows.dtype)

    # 4) point conv + BN + act (+ SE gating, shortcut conv+BN, residual)
    w_pt, b_pt = _fold_bn_pw(params["point"])
    if stride == 1:
        w_sc, b_sc = _fold_bn_pw(params["shortcut"])
        out_rows = _pw_conv_res(y_rows, scale3, x_rows, w_pt, b_pt, w_sc, b_sc,
                                act=activate)
    else:
        out_rows = _pw_conv(y_rows, scale3, w_pt, b_pt, act=activate)

    Cout = w_pt.shape[1]
    out = out_rows.reshape(N, Ho, Wo, Cout)
    return jnp.transpose(out, (0, 3, 1, 2))


# ----------------------------------------------------------------------------
# parameter init
# ----------------------------------------------------------------------------
def _init_bn(key, c):
    k1, k2, k3, k4 = jax.random.split(key, 4)
    return {"gamma": 1.0 + 0.1 * jax.random.normal(k1, (c,), jnp.float32),
            "beta": 0.1 * jax.random.normal(k2, (c,), jnp.float32),
            "mean": 0.1 * jax.random.normal(k3, (c,), jnp.float32),
            "var": jax.nn.softplus(jax.random.normal(k4, (c,), jnp.float32)) + 0.5}


def init_params(key, in_c, mid_c, out_c, k, use_se, divide=4):
    ks = jax.random.split(key, 16)
    params = {
        "exp": {"w": jax.random.normal(ks[0], (in_c, mid_c), jnp.float32) / jnp.sqrt(in_c),
                "b": 0.05 * jax.random.normal(ks[1], (mid_c,), jnp.float32),
                "bn": _init_bn(ks[2], mid_c)},
        "dw": {"w": jax.random.normal(ks[3], (k, k, mid_c), jnp.float32) / k,
               "b": 0.05 * jax.random.normal(ks[4], (mid_c,), jnp.float32),
               "bn": _init_bn(ks[5], mid_c)},
        "point": {"w": jax.random.normal(ks[6], (mid_c, out_c), jnp.float32) / jnp.sqrt(mid_c),
                  "b": 0.05 * jax.random.normal(ks[7], (out_c,), jnp.float32),
                  "bn": _init_bn(ks[8], out_c)},
        "shortcut": {"w": jax.random.normal(ks[9], (in_c, out_c), jnp.float32) / jnp.sqrt(in_c),
                     "b": 0.05 * jax.random.normal(ks[10], (out_c,), jnp.float32),
                     "bn": _init_bn(ks[11], out_c)},
    }
    if use_se:
        m = mid_c // divide
        params["se"] = {
            "w1": jax.random.normal(ks[12], (mid_c, m), jnp.float32) / jnp.sqrt(mid_c),
            "b1": 0.05 * jax.random.normal(ks[13], (m,), jnp.float32),
            "w2": jax.random.normal(ks[14], (m, mid_c), jnp.float32) / jnp.sqrt(m),
            "b2": 0.05 * jax.random.normal(ks[15], (mid_c,), jnp.float32)}
    return params


# ----------------------------------------------------------------------------
# pure-JAX reference (unfused, NCHW), mirrors the torch module in eval mode
# ----------------------------------------------------------------------------
def _bn_ref(x, bn):
    sh = (1, -1, 1, 1)
    return ((x - bn["mean"].reshape(sh)) / jnp.sqrt(bn["var"].reshape(sh) + _EPS)
            * bn["gamma"].reshape(sh) + bn["beta"].reshape(sh))


def _pw_ref(x, p, act):
    y = jnp.einsum("nchw,co->nohw", x, p["w"], precision=lax.Precision.HIGHEST)
    y = y + p["b"][None, :, None, None]
    return _apply_act(_bn_ref(y, p["bn"]), act)


def _dw_ref(x, p, k, stride, act):
    C = x.shape[1]
    w = jnp.transpose(p["w"], (2, 0, 1))[:, None, :, :]        # (C, 1, k, k)
    pad = (k - 1) // 2
    y = lax.conv_general_dilated(x, w, (stride, stride), [(pad, pad), (pad, pad)],
                                 dimension_numbers=("NCHW", "OIHW", "NCHW"),
                                 feature_group_count=C,
                                 precision=lax.Precision.HIGHEST)
    y = y + p["b"][None, :, None, None]
    return _apply_act(_bn_ref(y, p["bn"]), act)


def _se_ref(x, p):
    pooled = jnp.mean(x, axis=(2, 3))
    h = jnp.clip(jnp.dot(pooled, p["w1"], precision=lax.Precision.HIGHEST) + p["b1"], 0.0, 6.0)
    s = jnp.dot(h, p["w2"], precision=lax.Precision.HIGHEST) + p["b2"]
    s = s * jnp.clip(s + 3.0, 0.0, 6.0) / 6.0
    return x * s[:, :, None, None]


def ref_forward(params, x, *, kernel_size, stride, activate, use_se):
    out = _pw_ref(x, params["exp"], activate)
    out = _dw_ref(out, params["dw"], kernel_size, stride, activate)
    if use_se:
        out = _se_ref(out, params["se"])
    out = _pw_ref(out, params["point"], activate)
    if stride == 1:
        out = out + _pw_ref(x, params["shortcut"], "none")
    return out


# ----------------------------------------------------------------------------
if __name__ == "__main__":
    key = jax.random.PRNGKey(0)
    kx, kp = jax.random.split(key)

    # Small config consistent with the module: se_kernel_size == spatial size.
    N, C_IN, H, W = 2, 16, 8, 8
    C_MID, C_OUT = 32, 16
    K, STRIDE, ACT, USE_SE = 3, 1, "hswish", True

    x = jax.random.normal(kx, (N, C_IN, H, W), dtype=jnp.float32)
    params = init_params(kp, C_IN, C_MID, C_OUT, K, USE_SE)

    fwd = jax.jit(functools.partial(se_inverted_bottleneck, kernel_size=K,
                                    stride=STRIDE, activate=ACT, use_se=USE_SE))
    out = jax.block_until_ready(fwd(params, x))

    ref = jax.block_until_ready(
        ref_forward(params, x, kernel_size=K, stride=STRIDE, activate=ACT,
                    use_se=USE_SE))

    assert out.shape == ref.shape == (N, C_OUT, H, W), (out.shape, ref.shape)
    err = float(jnp.max(jnp.abs(out - ref)))
    assert err < 5e-2, f"max abs err {err}"

    print("KERNEL_OK")
</pallas_src>

<mosaic_0001>
module attributes {stable_mosaic.version = 11 : i64} {
  func.func @_pw_kernel(%arg0: i32, %arg1: memref<1x64x16xf32, #tpu.memory_space<vmem>>, %arg2: memref<1x1x16xf32, #tpu.memory_space<vmem>>, %arg3: memref<16x32xf32, #tpu.memory_space<vmem>>, %arg4: memref<1x32xf32, #tpu.memory_space<vmem>>, %arg5: memref<1x64x32xf32, #tpu.memory_space<vmem>>) attributes {dimension_semantics = [#tpu.dimension_semantics<parallel>], iteration_bounds = array<i64: 2>, scalar_prefetch = 0 : i64, scratch_operands = 0 : i64, tpu.core_type = #tpu.core_type<tc>, window_params = [{transform_indices = @transform_0, window_bounds = array<i64: 1, 64, 16>}, {transform_indices = @transform_1, window_bounds = array<i64: 1, 1, 16>}, {pipeline_mode = #tpu.pipeline_mode<synchronous>, transform_indices = @transform_2, window_bounds = array<i64: 16, 32>}, {pipeline_mode = #tpu.pipeline_mode<synchronous>, transform_indices = @transform_3, window_bounds = array<i64: 1, 32>}, {transform_indices = @transform_4, window_bounds = array<i64: 1, 64, 32>}]} {
    %c0 = arith.constant 0 : index
    %c0_0 = arith.constant 0 : index
    %c0_1 = arith.constant 0 : index
    %0 = vector.load %arg1[%c0, %c0_0, %c0_1] : memref<1x64x16xf32, #tpu.memory_space<vmem>>, vector<1x64x16xf32>
    %1 = vector.shape_cast %0 : vector<1x64x16xf32> to vector<64x16xf32>
    %c0_2 = arith.constant 0 : index
    %c0_3 = arith.constant 0 : index
    %c0_4 = arith.constant 0 : index
    %2 = vector.load %arg2[%c0_2, %c0_3, %c0_4] : memref<1x1x16xf32, #tpu.memory_space<vmem>>, vector<1x1x16xf32>
    %3 = vector.shape_cast %2 : vector<1x1x16xf32> to vector<1x16xf32>
    %4 = vector.broadcast %3 : vector<1x16xf32> to vector<64x16xf32>
    %5 = arith.mulf %1, %4 : vector<64x16xf32>
    %c0_5 = arith.constant 0 : index
    %c0_6 = arith.constant 0 : index
    %6 = vector.load %arg3[%c0_5, %c0_6] : memref<16x32xf32, #tpu.memory_space<vmem>>, vector<16x32xf32>
    %cst = arith.constant dense<0.000000e+00> : vector<64x32xf32>
    %7 = tpu.matmul %5, %6, %cst {dimension_numbers = #tpu.dot_dimension_numbers<[1], [0], [0], [1], [0, 0, 1, 1], [], []>} : vector<64x16xf32>, vector<16x32xf32>, vector<64x32xf32> -> vector<64x32xf32>
    %c0_7 = arith.constant 0 : index
    %c0_8 = arith.constant 0 : index
    %8 = vector.load %arg4[%c0_7, %c0_8] : memref<1x32xf32, #tpu.memory_space<vmem>>, vector<1x32xf32>
    %9 = vector.broadcast %8 : vector<1x32xf32> to vector<64x32xf32>
    %10 = arith.addf %7, %9 : vector<64x32xf32>
    %cst_9 = arith.constant 3.000000e+00 : f32
    %11 = vector.broadcast %cst_9 : f32 to vector<64x32xf32>
    %12 = arith.addf %10, %11 : vector<64x32xf32>
    %cst_10 = arith.constant 0.000000e+00 : f32
    %cst_11 = arith.constant 6.000000e+00 : f32
    %13 = vector.broadcast %cst_10 : f32 to vector<64x32xf32>
    %14 = arith.maximumf %13, %12 : vector<64x32xf32>
    %15 = vector.broadcast %cst_11 : f32 to vector<64x32xf32>
    %16 = arith.minimumf %15, %14 : vector<64x32xf32>
    %17 = arith.mulf %10, %16 : vector<64x32xf32>
    %cst_12 = arith.constant 0.166666672 : f32
    %18 = vector.broadcast %cst_12 : f32 to vector<64x32xf32>
    %19 = arith.mulf %17, %18 : vector<64x32xf32>
    %c0_13 = arith.constant 0 : index
    %c0_14 = arith.constant 0 : index
    %c0_15 = arith.constant 0 : index
    %20 = vector.load %arg5[%c0_13, %c0_14, %c0_15] : memref<1x64x32xf32, #tpu.memory_space<vmem>>, vector<1x64x32xf32>
    %21 = vector.shape_cast %20 : vector<1x64x32xf32> to vector<64x32xf32>
    %22 = vector.shape_cast %19 : vector<64x32xf32> to vector<1x64x32xf32>
    tpu.vector_store %arg5[%c0_13, %c0_14, %c0_15], %22 {strides = array<i32>} : memref<1x64x32xf32, #tpu.memory_space<vmem>>, vector<1x64x32xf32>,
    return
  }
  func.func @transform_0(%arg0: i32) -> (i32, i32, i32) {
    %c0_i32 = arith.constant 0 : i32
    %c0_i32_0 = arith.constant 0 : i32
    %c0_i32_1 = arith.constant 0 : i32
    return %arg0, %c0_i32, %c0_i32_0 : i32, i32, i32
  }
  func.func @transform_1(%arg0: i32) -> (i32, i32, i32) {
    %c0_i32 = arith.constant 0 : i32
    %c0_i32_0 = arith.constant 0 : i32
    %c0_i32_1 = arith.constant 0 : i32
    return %arg0, %c0_i32, %c0_i32_0 : i32, i32, i32
  }
  func.func @transform_2(%arg0: i32) -> (i32, i32) {
    %c0_i32 = arith.constant 0 : i32
    %c0_i32_0 = arith.constant 0 : i32
    %c0_i32_1 = arith.constant 0 : i32
    return %c0_i32, %c0_i32_0 : i32, i32
  }
  func.func @transform_3(%arg0: i32) -> (i32, i32) {
    %c0_i32 = arith.constant 0 : i32
    %c0_i32_0 = arith.constant 0 : i32
    %c0_i32_1 = arith.constant 0 : i32
    return %c0_i32, %c0_i32_0 : i32, i32
  }
  func.func @transform_4(%arg0: i32) -> (i32, i32, i32) {
    %c0_i32 = arith.constant 0 : i32
    %c0_i32_0 = arith.constant 0 : i32
    %c0_i32_1 = arith.constant 0 : i32
    return %arg0, %c0_i32, %c0_i32_0 : i32, i32, i32
  }
}

module attributes {stable_mosaic.version = 11 : i64} {
  func.func @_dw_kernel(%arg0: i32, %arg1: memref<1x10x10x32xf32, #tpu.memory_space<vmem>>, %arg2: memref<3x3x32xf32, #tpu.memory_space<vmem>>, %arg3: memref<1x32xf32, #tpu.memory_space<vmem>>, %arg4: memref<1x8x8x32xf32, #tpu.memory_space<vmem>>, %arg5: memref<1x1x32xf32, #tpu.memory_space<vmem>>) attributes {dimension_semantics = [#tpu.dimension_semantics<parallel>], iteration_bounds = array<i64: 2>, scalar_prefetch = 0 : i64, scratch_operands = 0 : i64, tpu.core_type = #tpu.core_type<tc>, window_params = [{transform_indices = @transform_0, window_bounds = array<i64: 1, 10, 10, 32>}, {pipeline_mode = #tpu.pipeline_mode<synchronous>, transform_indices = @transform_1, window_bounds = array<i64: 3, 3, 32>}, {pipeline_mode = #tpu.pipeline_mode<synchronous>, transform_indices = @transform_2, window_bounds = array<i64: 1, 32>}, {transform_indices = @transform_3, window_bounds = array<i64: 1, 8, 8, 32>}, {transform_indices = @transform_4, window_bounds = array<i64: 1, 1, 32>}]} {
    %cst = arith.constant 0.000000e+00 : f32
    %0 = vector.broadcast %cst : f32 to vector<8x8x32xf32>
    %c0 = arith.constant 0 : index
    %c0_0 = arith.constant 0 : index
    %c0_1 = arith.constant 0 : index
    %c0_2 = arith.constant 0 : index
    %1 = vector.load %arg1[%c0, %c0_0, %c0_1, %c0_2] : memref<1x10x10x32xf32, #tpu.memory_space<vmem>>, vector<1x8x8x32xf32>
    %2 = vector.shape_cast %1 : vector<1x8x8x32xf32> to vector<8x8x32xf32>
    %c0_3 = arith.constant 0 : index
    %c0_4 = arith.constant 0 : index
    %c0_5 = arith.constant 0 : index
    %3 = vector.load %arg2[%c0_3, %c0_4, %c0_5] : memref<3x3x32xf32, #tpu.memory_space<vmem>>, vector<1x1x32xf32>
    %4 = vector.shape_cast %3 : vector<1x1x32xf32> to vector<32xf32>
    %5 = vector.shape_cast %4 : vector<32xf32> to vector<1x1x32xf32>
    %6 = vector.broadcast %5 : vector<1x1x32xf32> to vector<8x8x32xf32>
    %7 = arith.mulf %2, %6 : vector<8x8x32xf32>
    %8 = arith.addf %0, %7 : vector<8x8x32xf32>
    %c0_6 = arith.constant 0 : index
    %c0_7 = arith.constant 0 : index
    %c1 = arith.constant 1 : index
    %c0_8 = arith.constant 0 : index
    %9 = vector.load %arg1[%c0_6, %c0_7, %c1, %c0_8] : memref<1x10x10x32xf32, #tpu.memory_space<vmem>>, vector<1x8x8x32xf32>
    %10 = vector.shape_cast %9 : vector<1x8x8x32xf32> to vector<8x8x32xf32>
    %c0_9 = arith.constant 0 : index
    %c1_10 = arith.constant 1 : index
    %c0_11 = arith.constant 0 : index
    %11 = vector.load %arg2[%c0_9, %c1_10, %c0_11] : memref<3x3x32xf32, #tpu.memory_space<vmem>>, vector<1x1x32xf32>
    %12 = vector.shape_cast %11 : vector<1x1x32xf32> to vector<32xf32>
    %13 = vector.shape_cast %12 : vector<32xf32> to vector<1x1x32xf32>
    %14 = vector.broadcast %13 : vector<1x1x32xf32> to vector<8x8x32xf32>
    %15 = arith.mulf %10, %14 : vector<8x8x32xf32>
    %16 = arith.addf %8, %15 : vector<8x8x32xf32>
    %c0_12 = arith.constant 0 : index
    %c0_13 = arith.constant 0 : index
    %c2 = arith.constant 2 : index
    %c0_14 = arith.constant 0 : index
    %17 = vector.load %arg1[%c0_12, %c0_13, %c2, %c0_14] : memref<1x10x10x32xf32, #tpu.memory_space<vmem>>, vector<1x8x8x32xf32>
    %18 = vector.shape_cast %17 : vector<1x8x8x32xf32> to vector<8x8x32xf32>
    %c0_15 = arith.constant 0 : index
    %c2_16 = arith.constant 2 : index
    %c0_17 = arith.constant 0 : index
    %19 = vector.load %arg2[%c0_15, %c2_16, %c0_17] : memref<3x3x32xf32, #tpu.memory_space<vmem>>, vector<1x1x32xf32>
    %20 = vector.shape_cast %19 : vector<1x1x32xf32> to vector<32xf32>
    %21 = vector.shape_cast %20 : vector<32xf32> to vector<1x1x32xf32>
    %22 = vector.broadcast %21 : vector<1x1x32xf32> to vector<8x8x32xf32>
    %23 = arith.mulf %18, %22 : vector<8x8x32xf32>
    %24 = arith.addf %16, %23 : vector<8x8x32xf32>
    %c0_18 = arith.constant 0 : index
    %c1_19 = arith.constant 1 : index
    %c0_20 = arith.constant 0 : index
    %c0_21 = arith.constant 0 : index
    %25 = vector.load %arg1[%c0_18, %c1_19, %c0_20, %c0_21] : memref<1x10x10x32xf32, #tpu.memory_space<vmem>>, vector<1x8x8x32xf32>
    %26 = vector.shape_cast %25 : vector<1x8x8x32xf32> to vector<8x8x32xf32>
    %c1_22 = arith.constant 1 : index
    %c0_23 = arith.constant 0 : index
    %c0_24 = arith.constant 0 : index
    %27 = vector.load %arg2[%c1_22, %c0_23, %c0_24] : memref<3x3x32xf32, #tpu.memory_space<vmem>>, vector<1x1x32xf32>
    %28 = vector.shape_cast %27 : vector<1x1x32xf32> to vector<32xf32>
    %29 = vector.shape_cast %28 : vector<32xf32> to vector<1x1x32xf32>
    %30 = vector.broadcast %29 : vector<1x1x32xf32> to vector<8x8x32xf32>
    %31 = arith.mulf %26, %30 : vector<8x8x32xf32>
    %32 = arith.addf %24, %31 : vector<8x8x32xf32>
    %c0_25 = arith.constant 0 : index
    %c1_26 = arith.constant 1 : index
    %c1_27 = arith.constant 1 : index
    %c0_28 = arith.constant 0 : index
    %33 = vector.load %arg1[%c0_25, %c1_26, %c1_27, %c0_28] : memref<1x10x10x32xf32, #tpu.memory_space<vmem>>, vector<1x8x8x32xf32>
    %34 = vector.shape_cast %33 : vector<1x8x8x32xf32> to vector<8x8x32xf32>
    %c1_29 = arith.constant 1 : index
    %c1_30 = arith.constant 1 : index
    %c0_31 = arith.constant 0 : index
    %35 = vector.load %arg2[%c1_29, %c1_30, %c0_31] : memref<3x3x32xf32, #tpu.memory_space<vmem>>, vector<1x1x32xf32>
    %36 = vector.shape_cast %35 : vector<1x1x32xf32> to vector<32xf32>
    %37 = vector.shape_cast %36 : vector<32xf32> to vector<1x1x32xf32>
    %38 = vector.broadcast %37 : vector<1x1x32xf32> to vector<8x8x32xf32>
    %39 = arith.mulf %34, %38 : vector<8x8x32xf32>
    %40 = arith.addf %32, %39 : vector<8x8x32xf32>
    %c0_32 = arith.constant 0 : index
    %c1_33 = arith.constant 1 : index
    %c2_34 = arith.constant 2 : index
    %c0_35 = arith.constant 0 : index
    %41 = vector.load %arg1[%c0_32, %c1_33, %c2_34, %c0_35] : memref<1x10x10x32xf32, #tpu.memory_space<vmem>>, vector<1x8x8x32xf32>
    %42 = vector.shape_cast %41 : vector<1x8x8x32xf32> to vector<8x8x32xf32>
    %c1_36 = arith.constant 1 : index
    %c2_37 = arith.constant 2 : index
    %c0_38 = arith.constant 0 : index
    %43 = vector.load %arg2[%c1_36, %c2_37, %c0_38] : memref<3x3x32xf32, #tpu.memory_space<vmem>>, vector<1x1x32xf32>
    %44 = vector.shape_cast %43 : vector<1x1x32xf32> to vector<32xf32>
    %45 = vector.shape_cast %44 : vector<32xf32> to vector<1x1x32xf32>
    %46 = vector.broadcast %45 : vector<1x1x32xf32> to vector<8x8x32xf32>
    %47 = arith.mulf %42, %46 : vector<8x8x32xf32>
    %48 = arith.addf %40, %47 : vector<8x8x32xf32>
    %c0_39 = arith.constant 0 : index
    %c2_40 = arith.constant 2 : index
    %c0_41 = arith.constant 0 : index
    %c0_42 = arith.constant 0 : index
    %49 = vector.load %arg1[%c0_39, %c2_40, %c0_41, %c0_42] : memref<1x10x10x32xf32, #tpu.memory_space<vmem>>, vector<1x8x8x32xf32>
    %50 = vector.shape_cast %49 : vector<1x8x8x32xf32> to vector<8x8x32xf32>
    %c2_43 = arith.constant 2 : index
    %c0_44 = arith.constant 0 : index
    %c0_45 = arith.constant 0 : index
    %51 = vector.load %arg2[%c2_43, %c0_44, %c0_45] : memref<3x3x32xf32, #tpu.memory_space<vmem>>, vector<1x1x32xf32>
    %52 = vector.shape_cast %51 : vector<1x1x32xf32> to vector<32xf32>
    %53 = vector.shape_cast %52 : vector<32xf32> to vector<1x1x32xf32>
    %54 = vector.broadcast %53 : vector<1x1x32xf32> to vector<8x8x32xf32>
    %55 = arith.mulf %50, %54 : vector<8x8x32xf32>
    %56 = arith.addf %48, %55 : vector<8x8x32xf32>
    %c0_46 = arith.constant 0 : index
    %c2_47 = arith.constant 2 : index
    %c1_48 = arith.constant 1 : index
    %c0_49 = arith.constant 0 : index
    %57 = vector.load %arg1[%c0_46, %c2_47, %c1_48, %c0_49] : memref<1x10x10x32xf32, #tpu.memory_space<vmem>>, vector<1x8x8x32xf32>
    %58 = vector.shape_cast %57 : vector<1x8x8x32xf32> to vector<8x8x32xf32>
    %c2_50 = arith.constant 2 : index
    %c1_51 = arith.constant 1 : index
    %c0_52 = arith.constant 0 : index
    %59 = vector.load %arg2[%c2_50, %c1_51, %c0_52] : memref<3x3x32xf32, #tpu.memory_space<vmem>>, vector<1x1x32xf32>
    %60 = vector.shape_cast %59 : vector<1x1x32xf32> to vector<32xf32>
    %61 = vector.shape_cast %60 : vector<32xf32> to vector<1x1x32xf32>
    %62 = vector.broadcast %61 : vector<1x1x32xf32> to vector<8x8x32xf32>
    %63 = arith.mulf %58, %62 : vector<8x8x32xf32>
    %64 = arith.addf %56, %63 : vector<8x8x32xf32>
    %c0_53 = arith.constant 0 : index
    %c2_54 = arith.constant 2 : index
    %c2_55 = arith.constant 2 : index
    %c0_56 = arith.constant 0 : index
    %65 = vector.load %arg1[%c0_53, %c2_54, %c2_55, %c0_56] : memref<1x10x10x32xf32, #tpu.memory_space<vmem>>, vector<1x8x8x32xf32>
    %66 = vector.shape_cast %65 : vector<1x8x8x32xf32> to vector<8x8x32xf32>
    %c2_57 = arith.constant 2 : index
    %c2_58 = arith.constant 2 : index
    %c0_59 = arith.constant 0 : index
    %67 = vector.load %arg2[%c2_57, %c2_58, %c0_59] : memref<3x3x32xf32, #tpu.memory_space<vmem>>, vector<1x1x32xf32>
    %68 = vector.shape_cast %67 : vector<1x1x32xf32> to vector<32xf32>
    %69 = vector.shape_cast %68 : vector<32xf32> to vector<1x1x32xf32>
    %70 = vector.broadcast %69 : vector<1x1x32xf32> to vector<8x8x32xf32>
    %71 = arith.mulf %66, %70 : vector<8x8x32xf32>
    %72 = arith.addf %64, %71 : vector<8x8x32xf32>
    %c0_60 = arith.constant 0 : index
    %c0_61 = arith.constant 0 : index
    %73 = vector.load %arg3[%c0_60, %c0_61] : memref<1x32xf32, #tpu.memory_space<vmem>>, vector<1x32xf32>
    %74 = vector.shape_cast %73 : vector<1x32xf32> to vector<1x1x32xf32>
    %75 = vector.broadcast %74 : vector<1x1x32xf32> to vector<8x8x32xf32>
    %76 = arith.addf %72, %75 : vector<8x8x32xf32>
    %cst_62 = arith.constant 3.000000e+00 : f32
    %77 = vector.broadcast %cst_62 : f32 to vector<8x8x32xf32>
    %78 = arith.addf %76, %77 : vector<8x8x32xf32>
    %cst_63 = arith.constant 0.000000e+00 : f32
    %cst_64 = arith.constant 6.000000e+00 : f32
    %79 = vector.broadcast %cst_63 : f32 to vector<8x8x32xf32>
    %80 = arith.maximumf %79, %78 : vector<8x8x32xf32>
    %81 = vector.broadcast %cst_64 : f32 to vector<8x8x32xf32>
    %82 = arith.minimumf %81, %80 : vector<8x8x32xf32>
    %83 = arith.mulf %76, %82 : vector<8x8x32xf32>
    %cst_65 = arith.constant 0.166666672 : f32
    %84 = vector.broadcast %cst_65 : f32 to vector<8x8x32xf32>
    %85 = arith.mulf %83, %84 : vector<8x8x32xf32>
    %c0_66 = arith.constant 0 : index
    %c0_67 = arith.constant 0 : index
    %c0_68 = arith.constant 0 : index
    %c0_69 = arith.constant 0 : index
    %86 = vector.load %arg4[%c0_66, %c0_67, %c0_68, %c0_69] : memref<1x8x8x32xf32, #tpu.memory_space<vmem>>, vector<1x8x8x32xf32>
    %87 = vector.shape_cast %86 : vector<1x8x8x32xf32> to vector<8x8x32xf32>
    %88 = vector.shape_cast %85 : vector<8x8x32xf32> to vector<1x8x8x32xf32>
    tpu.vector_store %arg4[%c0_66, %c0_67, %c0_68, %c0_69], %88 {strides = array<i32>} : memref<1x8x8x32xf32, #tpu.memory_space<vmem>>, vector<1x8x8x32xf32>,
    %cst_70 = arith.constant dense<0.000000e+00> : vector<32xf32>
    %89 = vector.multi_reduction <add>, %85, %cst_70 [0, 1] : vector<8x8x32xf32> to vector<32xf32>
    %90 = vector.shape_cast %89 : vector<32xf32> to vector<1x1x32xf32>
    %cst_71 = arith.constant 6.400000e+01 : f32
    %91 = vector.broadcast %cst_71 : f32 to vector<1x1x32xf32>
    %92 = arith.divf %90, %91 : vector<1x1x32xf32>
    %c0_72 = arith.constant 0 : index
    %c0_73 = arith.constant 0 : index
    %c0_74 = arith.constant 0 : index
    %93 = vector.load %arg5[%c0_72, %c0_73, %c0_74] : memref<1x1x32xf32, #tpu.memory_space<vmem>>, vector<1x1x32xf32>
    tpu.vector_store %arg5[%c0_72, %c0_73, %c0_74], %92 {strides = array<i32>} : memref<1x1x32xf32, #tpu.memory_space<vmem>>, vector<1x1x32xf32>,
    return
  }
  func.func @transform_0(%arg0: i32) -> (i32, i32, i32, i32) {
    %c0_i32 = arith.constant 0 : i32
    %c0_i32_0 = arith.constant 0 : i32
    %c0_i32_1 = arith.constant 0 : i32
    %c0_i32_2 = arith.constant 0 : i32
    return %arg0, %c0_i32, %c0_i32_0, %c0_i32_1 : i32, i32, i32, i32
  }
  func.func @transform_1(%arg0: i32) -> (i32, i32, i32) {
    %c0_i32 = arith.constant 0 : i32
    %c0_i32_0 = arith.constant 0 : i32
    %c0_i32_1 = arith.constant 0 : i32
    %c0_i32_2 = arith.constant 0 : i32
    return %c0_i32, %c0_i32_0, %c0_i32_1 : i32, i32, i32
  }
  func.func @transform_2(%arg0: i32) -> (i32, i32) {
    %c0_i32 = arith.constant 0 : i32
    %c0_i32_0 = arith.constant 0 : i32
    %c0_i32_1 = arith.constant 0 : i32
    return %c0_i32, %c0_i32_0 : i32, i32
  }
  func.func @transform_3(%arg0: i32) -> (i32, i32, i32, i32) {
    %c0_i32 = arith.constant 0 : i32
    %c0_i32_0 = arith.constant 0 : i32
    %c0_i32_1 = arith.constant 0 : i32
    %c0_i32_2 = arith.constant 0 : i32
    return %arg0, %c0_i32, %c0_i32_0, %c0_i32_1 : i32, i32, i32, i32
  }
  func.func @transform_4(%arg0: i32) -> (i32, i32, i32) {
    %c0_i32 = arith.constant 0 : i32
    %c0_i32_0 = arith.constant 0 : i32
    %c0_i32_1 = arith.constant 0 : i32
    return %arg0, %c0_i32, %c0_i32_0 : i32, i32, i32
  }
}

module attributes {stable_mosaic.version = 11 : i64} {
  func.func @_se_mlp_kernel(%arg0: i32, %arg1: memref<2x32xf32, #tpu.memory_space<vmem>>, %arg2: memref<32x8xf32, #tpu.memory_space<vmem>>, %arg3: memref<1x8xf32, #tpu.memory_space<vmem>>, %arg4: memref<8x32xf32, #tpu.memory_space<vmem>>, %arg5: memref<1x32xf32, #tpu.memory_space<vmem>>, %arg6: memref<2x32xf32, #tpu.memory_space<vmem>>) attributes {dimension_semantics = [#tpu.dimension_semantics<arbitrary>], iteration_bounds = array<i64: 1>, scalar_prefetch = 0 : i64, scratch_operands = 0 : i64, tpu.core_type = #tpu.core_type<tc>, window_params = [{pipeline_mode = #tpu.pipeline_mode<synchronous>, transform_indices = @transform_0, window_bounds = array<i64: 2, 32>}, {pipeline_mode = #tpu.pipeline_mode<synchronous>, transform_indices = @transform_1, window_bounds = array<i64: 32, 8>}, {pipeline_mode = #tpu.pipeline_mode<synchronous>, transform_indices = @transform_2, window_bounds = array<i64: 1, 8>}, {pipeline_mode = #tpu.pipeline_mode<synchronous>, transform_indices = @transform_3, window_bounds = array<i64: 8, 32>}, {pipeline_mode = #tpu.pipeline_mode<synchronous>, transform_indices = @transform_4, window_bounds = array<i64: 1, 32>}, {pipeline_mode = #tpu.pipeline_mode<synchronous>, transform_indices = @transform_5, window_bounds = array<i64: 2, 32>}]} {
    %c0 = arith.constant 0 : index
    %c0_0 = arith.constant 0 : index
    %0 = vector.load %arg1[%c0, %c0_0] : memref<2x32xf32, #tpu.memory_space<vmem>>, vector<2x32xf32>
    %c0_1 = arith.constant 0 : index
    %c0_2 = arith.constant 0 : index
    %1 = vector.load %arg2[%c0_1, %c0_2] : memref<32x8xf32, #tpu.memory_space<vmem>>, vector<32x8xf32>
    %cst = arith.constant dense<0.000000e+00> : vector<2x8xf32>
    %2 = tpu.matmul %0, %1, %cst {dimension_numbers = #tpu.dot_dimension_numbers<[1], [0], [0], [1], [0, 0, 1, 1], [], []>} : vector<2x32xf32>, vector<32x8xf32>, vector<2x8xf32> -> vector<2x8xf32>
    %c0_3 = arith.constant 0 : index
    %c0_4 = arith.constant 0 : index
    %3 = vector.load %arg3[%c0_3, %c0_4] : memref<1x8xf32, #tpu.memory_space<vmem>>, vector<1x8xf32>
    %4 = vector.broadcast %3 : vector<1x8xf32> to vector<2x8xf32>
    %5 = arith.addf %2, %4 : vector<2x8xf32>
    %cst_5 = arith.constant 0.000000e+00 : f32
    %cst_6 = arith.constant 6.000000e+00 : f32
    %6 = vector.broadcast %cst_5 : f32 to vector<2x8xf32>
    %7 = arith.maximumf %6, %5 : vector<2x8xf32>
    %8 = vector.broadcast %cst_6 : f32 to vector<2x8xf32>
    %9 = arith.minimumf %8, %7 : vector<2x8xf32>
    %c0_7 = arith.constant 0 : index
    %c0_8 = arith.constant 0 : index
    %10 = vector.load %arg4[%c0_7, %c0_8] : memref<8x32xf32, #tpu.memory_space<vmem>>, vector<8x32xf32>
    %cst_9 = arith.constant dense<0.000000e+00> : vector<2x32xf32>
    %11 = tpu.matmul %9, %10, %cst_9 {dimension_numbers = #tpu.dot_dimension_numbers<[1], [0], [0], [1], [0, 0, 1, 1], [], []>} : vector<2x8xf32>, vector<8x32xf32>, vector<2x32xf32> -> vector<2x32xf32>
    %c0_10 = arith.constant 0 : index
    %c0_11 = arith.constant 0 : index
    %12 = vector.load %arg5[%c0_10, %c0_11] : memref<1x32xf32, #tpu.memory_space<vmem>>, vector<1x32xf32>
    %13 = vector.broadcast %12 : vector<1x32xf32> to vector<2x32xf32>
    %14 = arith.addf %11, %13 : vector<2x32xf32>
    %cst_12 = arith.constant 3.000000e+00 : f32
    %15 = vector.broadcast %cst_12 : f32 to vector<2x32xf32>
    %16 = arith.addf %14, %15 : vector<2x32xf32>
    %cst_13 = arith.constant 0.000000e+00 : f32
    %cst_14 = arith.constant 6.000000e+00 : f32
    %17 = vector.broadcast %cst_13 : f32 to vector<2x32xf32>
    %18 = arith.maximumf %17, %16 : vector<2x32xf32>
    %19 = vector.broadcast %cst_14 : f32 to vector<2x32xf32>
    %20 = arith.minimumf %19, %18 : vector<2x32xf32>
    %21 = arith.mulf %14, %20 : vector<2x32xf32>
    %cst_15 = arith.constant 0.166666672 : f32
    %22 = vector.broadcast %cst_15 : f32 to vector<2x32xf32>
    %23 = arith.mulf %21, %22 : vector<2x32xf32>
    %c0_16 = arith.constant 0 : index
    %c0_17 = arith.constant 0 : index
    %24 = vector.load %arg6[%c0_16, %c0_17] : memref<2x32xf32, #tpu.memory_space<vmem>>, vector<2x32xf32>
    tpu.vector_store %arg6[%c0_16, %c0_17], %23 {strides = array<i32>} : memref<2x32xf32, #tpu.memory_space<vmem>>, vector<2x32xf32>,
    return
  }
  func.func @transform_0(%arg0: i32) -> (i32, i32) {
    %c0_i32 = arith.constant 0 : i32
    %c0_i32_0 = arith.constant 0 : i32
    %c0_i32_1 = arith.constant 0 : i32
    return %c0_i32, %c0_i32_0 : i32, i32
  }
  func.func @transform_1(%arg0: i32) -> (i32, i32) {
    %c0_i32 = arith.constant 0 : i32
    %c0_i32_0 = arith.constant 0 : i32
    %c0_i32_1 = arith.constant 0 : i32
    return %c0_i32, %c0_i32_0 : i32, i32
  }
  func.func @transform_2(%arg0: i32) -> (i32, i32) {
    %c0_i32 = arith.constant 0 : i32
    %c0_i32_0 = arith.constant 0 : i32
    %c0_i32_1 = arith.constant 0 : i32
    return %c0_i32, %c0_i32_0 : i32, i32
  }
  func.func @transform_3(%arg0: i32) -> (i32, i32) {
    %c0_i32 = arith.constant 0 : i32
    %c0_i32_0 = arith.constant 0 : i32
    %c0_i32_1 = arith.constant 0 : i32
    return %c0_i32, %c0_i32_0 : i32, i32
  }
  func.func @transform_4(%arg0: i32) -> (i32, i32) {
    %c0_i32 = arith.constant 0 : i32
    %c0_i32_0 = arith.constant 0 : i32
    %c0_i32_1 = arith.constant 0 : i32
    return %c0_i32, %c0_i32_0 : i32, i32
  }
  func.func @transform_5(%arg0: i32) -> (i32, i32) {
    %c0_i32 = arith.constant 0 : i32
    %c0_i32_0 = arith.constant 0 : i32
    %c0_i32_1 = arith.constant 0 : i32
    return %c0_i32, %c0_i32_0 : i32, i32
  }
}

module attributes {stable_mosaic.version = 11 : i64} {
  func.func @_pw_res_kernel(%arg0: i32, %arg1: memref<1x64x32xf32, #tpu.memory_space<vmem>>, %arg2: memref<1x1x32xf32, #tpu.memory_space<vmem>>, %arg3: memref<1x64x16xf32, #tpu.memory_space<vmem>>, %arg4: memref<32x16xf32, #tpu.memory_space<vmem>>, %arg5: memref<1x16xf32, #tpu.memory_space<vmem>>, %arg6: memref<16x16xf32, #tpu.memory_space<vmem>>, %arg7: memref<1x16xf32, #tpu.memory_space<vmem>>, %arg8: memref<1x64x16xf32, #tpu.memory_space<vmem>>) attributes {dimension_semantics = [#tpu.dimension_semantics<parallel>], iteration_bounds = array<i64: 2>, scalar_prefetch = 0 : i64, scratch_operands = 0 : i64, tpu.core_type = #tpu.core_type<tc>, window_params = [{transform_indices = @transform_0, window_bounds = array<i64: 1, 64, 32>}, {transform_indices = @transform_1, window_bounds = array<i64: 1, 1, 32>}, {transform_indices = @transform_2, window_bounds = array<i64: 1, 64, 16>}, {pipeline_mode = #tpu.pipeline_mode<synchronous>, transform_indices = @transform_3, window_bounds = array<i64: 32, 16>}, {pipeline_mode = #tpu.pipeline_mode<synchronous>, transform_indices = @transform_4, window_bounds = array<i64: 1, 16>}, {pipeline_mode = #tpu.pipeline_mode<synchronous>, transform_indices = @transform_5, window_bounds = array<i64: 16, 16>}, {pipeline_mode = #tpu.pipeline_mode<synchronous>, transform_indices = @transform_6, window_bounds = array<i64: 1, 16>}, {transform_indices = @transform_7, window_bounds = array<i64: 1, 64, 16>}]} {
    %c0 = arith.constant 0 : index
    %c0_0 = arith.constant 0 : index
    %c0_1 = arith.constant 0 : index
    %0 = vector.load %arg1[%c0, %c0_0, %c0_1] : memref<1x64x32xf32, #tpu.memory_space<vmem>>, vector<1x64x32xf32>
    %1 = vector.shape_cast %0 : vector<1x64x32xf32> to vector<64x32xf32>
    %c0_2 = arith.constant 0 : index
    %c0_3 = arith.constant 0 : index
    %c0_4 = arith.constant 0 : index
    %2 = vector.load %arg2[%c0_2, %c0_3, %c0_4] : memref<1x1x32xf32, #tpu.memory_space<vmem>>, vector<1x1x32xf32>
    %3 = vector.shape_cast %2 : vector<1x1x32xf32> to vector<1x32xf32>
    %4 = vector.broadcast %3 : vector<1x32xf32> to vector<64x32xf32>
    %5 = arith.mulf %1, %4 : vector<64x32xf32>
    %c0_5 = arith.constant 0 : index
    %c0_6 = arith.constant 0 : index
    %6 = vector.load %arg4[%c0_5, %c0_6] : memref<32x16xf32, #tpu.memory_space<vmem>>, vector<32x16xf32>
    %cst = arith.constant dense<0.000000e+00> : vector<64x16xf32>
    %7 = tpu.matmul %5, %6, %cst {dimension_numbers = #tpu.dot_dimension_numbers<[1], [0], [0], [1], [0, 0, 1, 1], [], []>} : vector<64x32xf32>, vector<32x16xf32>, vector<64x16xf32> -> vector<64x16xf32>
    %c0_7 = arith.constant 0 : index
    %c0_8 = arith.constant 0 : index
    %8 = vector.load %arg5[%c0_7, %c0_8] : memref<1x16xf32, #tpu.memory_space<vmem>>, vector<1x16xf32>
    %9 = vector.broadcast %8 : vector<1x16xf32> to vector<64x16xf32>
    %10 = arith.addf %7, %9 : vector<64x16xf32>
    %cst_9 = arith.constant 3.000000e+00 : f32
    %11 = vector.broadcast %cst_9 : f32 to vector<64x16xf32>
    %12 = arith.addf %10, %11 : vector<64x16xf32>
    %cst_10 = arith.constant 0.000000e+00 : f32
    %cst_11 = arith.constant 6.000000e+00 : f32
    %13 = vector.broadcast %cst_10 : f32 to vector<64x16xf32>
    %14 = arith.maximumf %13, %12 : vector<64x16xf32>
    %15 = vector.broadcast %cst_11 : f32 to vector<64x16xf32>
    %16 = arith.minimumf %15, %14 : vector<64x16xf32>
    %17 = arith.mulf %10, %16 : vector<64x16xf32>
    %cst_12 = arith.constant 0.166666672 : f32
    %18 = vector.broadcast %cst_12 : f32 to vector<64x16xf32>
    %19 = arith.mulf %17, %18 : vector<64x16xf32>
    %c0_13 = arith.constant 0 : index
    %c0_14 = arith.constant 0 : index
    %c0_15 = arith.constant 0 : index
    %20 = vector.load %arg3[%c0_13, %c0_14, %c0_15] : memref<1x64x16xf32, #tpu.memory_space<vmem>>, vector<1x64x16xf32>
    %21 = vector.shape_cast %20 : vector<1x64x16xf32> to vector<64x16xf32>
    %c0_16 = arith.constant 0 : index
    %c0_17 = arith.constant 0 : index
    %22 = vector.load %arg6[%c0_16, %c0_17] : memref<16x16xf32, #tpu.memory_space<vmem>>, vector<16x16xf32>
    %cst_18 = arith.constant dense<0.000000e+00> : vector<64x16xf32>
    %23 = tpu.matmul %21, %22, %cst_18 {dimension_numbers = #tpu.dot_dimension_numbers<[1], [0], [0], [1], [0, 0, 1, 1], [], []>} : vector<64x16xf32>, vector<16x16xf32>, vector<64x16xf32> -> vector<64x16xf32>
    %c0_19 = arith.constant 0 : index
    %c0_20 = arith.constant 0 : index
    %24 = vector.load %arg7[%c0_19, %c0_20] : memref<1x16xf32, #tpu.memory_space<vmem>>, vector<1x16xf32>
    %25 = vector.broadcast %24 : vector<1x16xf32> to vector<64x16xf32>
    %26 = arith.addf %23, %25 : vector<64x16xf32>
    %27 = arith.addf %19, %26 : vector<64x16xf32>
    %c0_21 = arith.constant 0 : index
    %c0_22 = arith.constant 0 : index
    %c0_23 = arith.constant 0 : index
    %28 = vector.load %arg8[%c0_21, %c0_22, %c0_23] : memref<1x64x16xf32, #tpu.memory_space<vmem>>, vector<1x64x16xf32>
    %29 = vector.shape_cast %28 : vector<1x64x16xf32> to vector<64x16xf32>
    %30 = vector.shape_cast %27 : vector<64x16xf32> to vector<1x64x16xf32>
    tpu.vector_store %arg8[%c0_21, %c0_22, %c0_23], %30 {strides = array<i32>} : memref<1x64x16xf32, #tpu.memory_space<vmem>>, vector<1x64x16xf32>,
    return
  }
  func.func @transform_0(%arg0: i32) -> (i32, i32, i32) {
    %c0_i32 = arith.constant 0 : i32
    %c0_i32_0 = arith.constant 0 : i32
    %c0_i32_1 = arith.constant 0 : i32
    return %arg0, %c0_i32, %c0_i32_0 : i32, i32, i32
  }
  func.func @transform_1(%arg0: i32) -> (i32, i32, i32) {
    %c0_i32 = arith.constant 0 : i32
    %c0_i32_0 = arith.constant 0 : i32
    %c0_i32_1 = arith.constant 0 : i32
    return %arg0, %c0_i32, %c0_i32_0 : i32, i32, i32
  }
  func.func @transform_2(%arg0: i32) -> (i32, i32, i32) {
    %c0_i32 = arith.constant 0 : i32
    %c0_i32_0 = arith.constant 0 : i32
    %c0_i32_1 = arith.constant 0 : i32
    return %arg0, %c0_i32, %c0_i32_0 : i32, i32, i32
  }
  func.func @transform_3(%arg0: i32) -> (i32, i32) {
    %c0_i32 = arith.constant 0 : i32
    %c0_i32_0 = arith.constant 0 : i32
    %c0_i32_1 = arith.constant 0 : i32
    return %c0_i32, %c0_i32_0 : i32, i32
  }
  func.func @transform_4(%arg0: i32) -> (i32, i32) {
    %c0_i32 = arith.constant 0 : i32
    %c0_i32_0 = arith.constant 0 : i32
    %c0_i32_1 = arith.constant 0 : i32
    return %c0_i32, %c0_i32_0 : i32, i32
  }
  func.func @transform_5(%arg0: i32) -> (i32, i32) {
    %c0_i32 = arith.constant 0 : i32
    %c0_i32_0 = arith.constant 0 : i32
    %c0_i32_1 = arith.constant 0 : i32
    return %c0_i32, %c0_i32_0 : i32, i32
  }
  func.func @transform_6(%arg0: i32) -> (i32, i32) {
    %c0_i32 = arith.constant 0 : i32
    %c0_i32_0 = arith.constant 0 : i32
    %c0_i32_1 = arith.constant 0 : i32
    return %c0_i32, %c0_i32_0 : i32, i32
  }
  func.func @transform_7(%arg0: i32) -> (i32, i32, i32) {
    %c0_i32 = arith.constant 0 : i32
    %c0_i32_0 = arith.constant 0 : i32
    %c0_i32_1 = arith.constant 0 : i32
    return %arg0, %c0_i32, %c0_i32_0 : i32, i32, i32
  }
}

</mosaic_0001>

<bundles_post_ra>
// kernel: se_inverted_bottleneck.4
= control target key start
LH: loop header
LB: loop body
LE: loop exit
PB: predicated region body
PF: predicated region fallthrough
CT: control target
= control target key end

     0   :  { %9 = vsyncpa [#allocation3], 0  ;;  %s759_s0 = inlined_call_operand.hbm [shape: f32[2,64,16], index: 0, kind: input, shape index: {}]   ;;  %s760_s1 = inlined_call_operand.vmem [shape: f32[2,1,16], index: 1, kind: input, shape index: {}]   ;;  %s761_s2 = inlined_call_operand.vmem [shape: f32[16,32], index: 2, kind: input, shape index: {}]   ;;  %s762_s3 = inlined_call_operand.vmem [shape: f32[1,32], index: 3, kind: input, shape index: {}]   ;;  %s763_s4 = inlined_call_operand.vmem [shape: f32[2,64,32], index: 4, kind: output, shape index: {}]  }
   0x1   :  { %11 = vsyncpa [#allocation3 + $0x1], 0  ;;  %s615_s15 = smov 0   ;;  %s617_s16 = smov 0  }
   0x2   :  { %s619_s17 = smov 0   ;;  %s621_s18 = smov 0  }
   0x3 LB: > { %s634_s19 = sadd.s32 4294967295, %s586_s18   ;;  %s637_s20 = sadd.s32 1, %s586_s18   ;;  %s586_s18 = sphi %s621_s18, %s770_s18   ;;  %s582_s17 = sphi %s619_s17, %s769_s17   ;;  %s578_s16 = sphi %s617_s16, %s768_s16   ;;  %s574_s15 = sphi %s615_s15, %s767_s15  }
   0x4   : > { %s21_s21 = ssub.s32 %s586_s18, %s637_s20  ;;  %s24_s22 = sadd.s32 1, %s582_s17 }
   0x5   : > { %p22_p0 = scmp.eq.s32.totalorder %s21_s21, 0  ;;  %p31_p1 = scmp.ne.s32.totalorder %s582_s17, %s578_s16 }
   0x6   : > { %p32_p2 = scmp.eq.s32.totalorder %s586_s18, 0  ;;  %p37_p3 = scmp.ne.s32.totalorder %s578_s16, %s574_s15 }
   0x7   : > { %s647_s23 = scalar_select %p22_p0, %s582_s17, %s24_s22  }
   0x8   : > { %p649_p4 = por %p32_p2, %p31_p1  ;;  %p38_p5 = scmp.eq.s32.totalorder %s634_s19, 0 }
   0x9   : > { %p485_p6 = scmp.lt.s32.totalorder %s586_s18, 2  ;;  %s161_s26 = sand.u32 1, %s582_s17  }
   0xa   : > { %p655_p7 = por %p38_p5, %p37_p3  ;;  %s454_s27 = sshll.u32 %s161_s26, 6 }
   0xb   : > { %s471_s28 = sshll.u32 %s586_s18, 6  ;;  %s165_s6 = scalar_lea.vmem [#allocation2], %s454_s27 }
   0xc   : > { %s170_s5 = scalar_lea.hbm %s759_s0, %s471_s28  ;;  %s173_s7 = sshll.u32 %s165_s6, 4  ;;  %s174_s7 = int_to_ptr.vmem [resolvable:$true] %s173_s7 }
   0xd   : > { %s171_s8 = sshll.u32 %s170_s5, 4  ;;  %p666_p8 = pnand %p485_p6, %p649_p4  ;;  %s172_s8 = int_to_ptr.hbm [resolvable:$true] %s171_s8 }
   0xe   : > { %p457_p9 = scmp.ge.s32.totalorder %s586_s18, 1  ;;  %s162_s10 = scalar_lea.sflag [#allocation3], %s161_s26 }
   0xf   : > { %s522_s11 = sshra.s32 %s172_s8, 4  ;;  %p526_p11 = pneg %p666_p8  ;;  %s523_s11 = int_to_ptr.hbm [resolvable:$true] %s522_s11 }
  0x10   : > { %s524_s12 = scalar_lea.hbm %s523_s11, 64  ;;  %s529_s15 = scalar_lea.hbm %s759_s0, 128 }
  0x11   : > { %p525_p10 = scmp.ne.s32.totalorder %s523_s11, %s524_s12  ;;  %p530_p0 = scmp.lt.s32.totalorder %s523_s11, %s759_s0 }
  0x12   : > { %p531_p1 = scmp.lt.s32.totalorder %s529_s15, %s524_s12 }
  0x13   : > { %p527_p12 = pnand %p526_p11, %p525_p10 }
  0x14   : > { %p532_p2 = por %p531_p1, %p530_p0 }
  0x15   : > { %p528_p13 = pneg %p527_p12 }
  0x17   : > { %p533_p3 = pnand %p532_p2, %p528_p13 }
  0x19   : > { %536 = shalt.err (!%p533_p3)
}
  0x1a   : > { %s588_s24 = smov 128   ;;  %s589_s26 = smov 8  }
  0x1b   : > { %484 = dma.hbm_to_vmem [thread:$0]  (!%p666_p8), %s172_s8, 1024, %s174_s7, %s162_s10, %s588_s24, %s588_s24, %s589_s26  }
  0x1c   : > { %p187_p4 = scmp.lt.s32.totalorder %s586_s18, 3 }
  0x1e   : > { %p188_p5 = pnand %p457_p9, %p187_p4 }
  0x1f   : > { %s193_s27 = sand.u32 (!%p188_p5), 1, %s578_s16  }
  0x20   : > { %191 = sbr.rel (%p188_p5) target bundleno = 200 (0xc8), region = 36  ;;  %s458_s28 = sshll.u32 (!%p188_p5), %s193_s27, 6 }
  0x21   : > { %s194_s29 = scalar_lea.sflag (!%p188_p5), [#allocation3], %s193_s27  ;;  %s685_s30 = scalar_lea.vmem (!%p188_p5), [#allocation2], %s458_s28 }
  0x25   : > { %569 = dma.done.wait (%p655_p7), %s194_s29, 1024  }
  0x26   : > { %571 = vsyncadd (%p655_p7), %s194_s29, 4294966272  ;;  %p226_p6 = scmp.lt.s32.totalorder %s634_s19, 1  ;;  %v255_v0 = vld [vmem:[%s761_s2 + $0x8] sm:$0xff]  ;;  %v254_v1 = vld [vmem:[%s761_s2] sm:$0xff]  ;;  %vm260_vm0 = vcmask 130048   ;;  %vm366_vm1 = vcmask 261120  }
  0x27   : > { %v234_v2 = vld [vmem:[%s685_s30] sm:$0xff]  ;;  %299 = vmatpush.msra.mxu0 %v255_v0  ;;  %473 = vmatpush.msra.mxu1 %v255_v0  ;;  %v236_v4 = vld [vmem:[%s685_s30 + $0x10] sm:$0xff]  ;;  %v235_v11 = vld [vmem:[%s685_s30 + $0x8] sm:$0xff] }
  0x28   : > { %s772_s19 = smov (!%p226_p6, %s634_s19), 1  ;;  %474 = vmatpush.msra.mxu2 %v255_v0  ;;  %475 = vmatpush.msra.mxu3 %v255_v0  ;;  %v238_v5 = vld [vmem:[%s685_s30 + $0x20] sm:$0xff]  ;;  %v240_v6 = vld [vmem:[%s685_s30 + $0x30] sm:$0xff]  ;;  %v237_v12 = vld [vmem:[%s685_s30 + $0x18] sm:$0xff] }
  0x29   : > { %s228_s6 = scalar_lea.vmem %s760_s1, %s772_s19  ;;  %300 = vmatpush.msra.mxu0 %v254_v1  ;;  %476 = vmatpush.msra.mxu1 %v254_v1  ;;  %v239_v13 = vld [vmem:[%s685_s30 + $0x28] sm:$0xff]  ;;  %v241_v14 = vld [vmem:[%s685_s30 + $0x38] sm:$0xff]  ;;  %v521_v19 = vld [vmem:[%s762_s3] ss:$0 sm:$0xff]  ;;  %s472_s12 = sshll.u32 %s772_s19, 6 }
  0x2a   : > { %v520_v3 = vld [vmem:[%s228_s6] ss:$0 sm:$0xff]  ;;  %477 = vmatpush.msra.mxu2 %v254_v1  ;;  %478 = vmatpush.msra.mxu3 %v254_v1  ;;  %s728_s15 = scalar_lea.vmem %s763_s4, %s472_s12 }
  0x2b   : > { %v246_v7 = vmul.f32 %v520_v3, %v234_v2  ;;  %v248_v8 = vmul.f32 %v520_v3, %v236_v4  ;;  %v250_v9 = vmul.f32 %v520_v3, %v238_v5  ;;  %v252_v10 = vmul.f32 %v520_v3, %v240_v6 }
  0x2c   : > { %v247_v15 = vmul.f32 %v520_v3, %v235_v11  ;;  %v249_v16 = vmul.f32 %v520_v3, %v237_v12  ;;  %v251_v17 = vmul.f32 %v520_v3, %v239_v13  ;;  %v253_v18 = vmul.f32 %v520_v3, %v241_v14 }
  0x2d   : > { %461 = vmatmul.msk.f32.vlgmr.msra.gmra.mxu0 %vm260_vm0, %v246_v7  ;;  %463 = vmatmul.msk.f32.vlgmr.msra.gmra.mxu1 %vm260_vm0, %v248_v8 }
  0x2e   : > { %465 = vmatmul.msk.f32.vlgmr.msra.gmra.mxu2 %vm260_vm0, %v250_v9  ;;  %467 = vmatmul.msk.f32.vlgmr.msra.gmra.mxu3 %vm260_vm0, %v252_v10 }
  0x35   : > { %462 = vmatmul.msk.f32.gmra.mxu0 %vm260_vm0, %v247_v15  ;;  %464 = vmatmul.msk.f32.gmra.mxu1 %vm260_vm0, %v249_v16 }
  0x36   : > { %466 = vmatmul.msk.f32.gmra.mxu2 %vm260_vm0, %v251_v17  ;;  %468 = vmatmul.msk.f32.gmra.mxu3 %vm260_vm0, %v253_v18 }
  0xaa   : > { %v302_v20 = vpop.f32.mrf.mxu0  ;;  %v308_v21 = vpop.f32.mrf.mxu1 }
  0xab   : > { %v303_v22 = vadd.f32 %v521_v19, %v302_v20  ;;  %v309_v23 = vadd.f32 %v521_v19, %v308_v21 }
  0xad   : > { %v326_v24 = vadd.f32 3.0, %v303_v22  ;;  %v328_v25 = vadd.f32 3.0, %v309_v23 }
  0xaf   : > { %v334_v26 = vmax.f32 %v326_v24, 0.0  ;;  %v336_v27 = vmax.f32 %v328_v25, 0.0 }
  0xb1   : > { %v342_v28 = vmin.f32 %v334_v26, 6.0  ;;  %v344_v29 = vmin.f32 %v336_v27, 6.0  ;;  %v314_v30 = vpop.f32.mrf.mxu2  ;;  %v320_v31 = vpop.f32.mrf.mxu3 }
  0xb2   : > { %v315_v32 = vadd.f32 %v521_v19, %v314_v30  ;;  %v321_v33 = vadd.f32 %v521_v19, %v320_v31  ;;  %v305_v34 = vpop.f32.mrf.mxu0  ;;  %v311_v35 = vpop.f32.mrf.mxu1 }
  0xb3   : > { %v350_v36 = vmul.f32 %v342_v28, %v303_v22  ;;  %v352_v37 = vmul.f32 %v344_v29, %v309_v23  ;;  %v306_v38 = vadd.f32 %v521_v19, %v305_v34  ;;  %v312_v39 = vadd.f32 %v521_v19, %v311_v35 }
  0xb4   : > { %v330_v40 = vadd.f32 3.0, %v315_v32  ;;  %v332_v41 = vadd.f32 3.0, %v321_v33 }
  0xb5   : > { %v358_v42 = vmul.f32 0.16666667, %v350_v36  ;;  %v360_v43 = vmul.f32 0.16666667, %v352_v37  ;;  %v327_v44 = vadd.f32 3.0, %v306_v38  ;;  %v329_v45 = vadd.f32 3.0, %v312_v39 }
  0xb6   : > { %v338_v46 = vmax.f32 %v330_v40, 0.0  ;;  %v340_v47 = vmax.f32 %v332_v41, 0.0 }
  0xb7   : > { %367 = vst.msk [vmem:[%s728_s15] sm:$0xff] %vm366_vm1, %v358_v42  ;;  %v335_v48 = vmax.f32 %v327_v44, 0.0  ;;  %v337_v49 = vmax.f32 %v329_v45, 0.0 }
  0xb8   : > { %369 = vst.msk [vmem:[%s728_s15 + $0x10] sm:$0xff] %vm366_vm1, %v360_v43  ;;  %v346_v50 = vmin.f32 %v338_v46, 6.0  ;;  %v348_v51 = vmin.f32 %v340_v47, 6.0 }
  0xb9   : > { %v343_v52 = vmin.f32 %v335_v48, 6.0  ;;  %v345_v53 = vmin.f32 %v337_v49, 6.0  ;;  %v317_v54 = vpop.f32.mrf.mxu2  ;;  %v323_v55 = vpop.f32.mrf.mxu3 }
  0xba   : > { %v354_v56 = vmul.f32 %v346_v50, %v315_v32  ;;  %v356_v57 = vmul.f32 %v348_v51, %v321_v33  ;;  %v318_v58 = vadd.f32 %v521_v19, %v317_v54  ;;  %v324_v59 = vadd.f32 %v521_v19, %v323_v55 }
  0xbb   : > { %v351_v60 = vmul.f32 %v343_v52, %v306_v38  ;;  %v353_v61 = vmul.f32 %v345_v53, %v312_v39 }
  0xbc   : > { %v362_v62 = vmul.f32 0.16666667, %v354_v56  ;;  %v364_v63 = vmul.f32 0.16666667, %v356_v57  ;;  %v331_v0 = vadd.f32 3.0, %v318_v58  ;;  %v333_v1 = vadd.f32 3.0, %v324_v59 }
  0xbd   : > { %v359_v2 = vmul.f32 0.16666667, %v351_v60  ;;  %v361_v3 = vmul.f32 0.16666667, %v353_v61 }
  0xbe   : > { %371 = vst.msk [vmem:[%s728_s15 + $0x20] sm:$0xff] %vm366_vm1, %v362_v62  ;;  %v339_v4 = vmax.f32 %v331_v0, 0.0  ;;  %v341_v5 = vmax.f32 %v333_v1, 0.0 }
  0xbf   : > { %373 = vst.msk [vmem:[%s728_s15 + $0x30] sm:$0xff] %vm366_vm1, %v364_v63 }
  0xc0   : > { %368 = vst.msk [vmem:[%s728_s15 + $0x8] sm:$0xff] %vm366_vm1, %v359_v2  ;;  %v347_v6 = vmin.f32 %v339_v4, 6.0  ;;  %v349_v7 = vmin.f32 %v341_v5, 6.0 }
  0xc1   : > { %370 = vst.msk [vmem:[%s728_s15 + $0x18] sm:$0xff] %vm366_vm1, %v361_v3 }
  0xc2   : > { %v355_v8 = vmul.f32 %v347_v6, %v318_v58  ;;  %v357_v9 = vmul.f32 %v349_v7, %v324_v59 }
  0xc4   : > { %v363_v10 = vmul.f32 0.16666667, %v355_v8  ;;  %v365_v11 = vmul.f32 0.16666667, %v357_v9 }
  0xc6   : > { %372 = vst.msk [vmem:[%s728_s15 + $0x28] sm:$0xff] %vm366_vm1, %v363_v10 }
  0xc7   : > { %374 = vst.msk [vmem:[%s728_s15 + $0x38] sm:$0xff] %vm366_vm1, %v365_v11 }
  0xc8 PF: > { %p14_p7 = scmp.ge.s32.totalorder %s637_s20, 4   ;;  %s767_s15 = smov %s578_s16 }
  0xc9   : > { %s768_s16 = smov %s582_s17  ;;  %s769_s17 = smov %s647_s23 }
  0xca   : > { %s770_s18 = smov %s637_s20  ;;  %16 = sbr.rel (!%p14_p7) target bundleno = 3 (0x3), region = 79 }
  0xcf   :  { %396 = vsyncpa [#allocation3], 1 }
  0xd0   :  { %398 = vsyncpa [#allocation3 + $0x1], 1 }

// kernel: se_inverted_bottleneck.6
= control target key start
LH: loop header
LB: loop body
LE: loop exit
PB: predicated region body
PF: predicated region fallthrough
CT: control target
= control target key end

     0   :  { %vm29_vm0 = vcmask 261120   ;;  %vm60_vm1 = vcmask 64512   ;;  %vm89_vm2 = vcmask 254976   ;;  %s156_s1 = inlined_call_operand.vmem [shape: f32[32,8], index: 1, kind: input, shape index: {}]   ;;  %s157_s2 = inlined_call_operand.vmem [shape: f32[1,8], index: 2, kind: input, shape index: {}]   ;;  %s158_s0 = inlined_call_operand.vmem [shape: f32[2,32], index: 0, kind: input, shape index: {}]   ;;  %s159_s4 = inlined_call_operand.vmem [shape: f32[1,32], index: 4, kind: input, shape index: {}]   ;;  %s160_s3 = inlined_call_operand.vmem [shape: f32[8,32], index: 3, kind: input, shape index: {}]   ;;  %s161_s5 = inlined_call_operand.vmem [shape: f32[2,32], index: 5, kind: output, shape index: {}]  }
   0x1   :  { %v24_v0 = vld [vmem:[%s156_s1 + $0x18] sm:$0xff]  ;;  %v23_v1 = vld [vmem:[%s156_s1 + $0x10] sm:$0xff]  ;;  %v22_v2 = vld [vmem:[%s156_s1 + $0x8] sm:$0xff] }
   0x2   :  { %45 = vmatpush.msra.mxu0 %v24_v0  ;;  %v21_v3 = vld [vmem:[%s156_s1] sm:$0xff] }
   0x3   :  { %v20_v4 = vld [vmem:[%s158_s0] sm:$0x3] }
   0x4   :  { %46 = vmatpush.msra.mxu0 %v23_v1  ;;  %v55_v5 = vld [vmem:[%s160_s3] sm:$0xff] }
   0x5   :  { %79 = vmatpush.msra.mxu1 %v55_v5  ;;  %v97_v6 = vld [vmem:[%s157_s2] ss:$0 sm:$0xff] }
   0x6   :  { %47 = vmatpush.msra.mxu0 %v22_v2  ;;  %v98_v11 = vld [vmem:[%s159_s4] ss:$0 sm:$0xff] }
   0x8   :  { %48 = vmatpush.msra.mxu0 %v21_v3 }
   0x9   :  { %95 = vmatmul.msk.f32.vlgmr.msra.gmra.mxu0 %vm29_vm0, %v20_v4 }
  0x86   :  { %v50_v7 = vpop.f32.mrf.mxu0 }
  0x87   :  { %v51_v8 = vadd.f32 %v97_v6, %v50_v7 }
  0x89   :  { %v53_v9 = vmax.f32 %v51_v8, 0.0 }
  0x8b   :  { %v54_v10 = vmin.f32 %v53_v9, 6.0 }
  0x8d   :  { %96 = vmatmul.msk.f32.vlgmr.msra.gmra.mxu1 %vm60_vm1, %v54_v10 }
 0x10a   :  { %v81_v12 = vpop.f32.mrf.mxu1 }
 0x10b   :  { %v82_v13 = vadd.f32 %v98_v11, %v81_v12 }
 0x10d   :  { %v84_v14 = vadd.f32 3.0, %v82_v13 }
 0x10f   :  { %v85_v15 = vmax.f32 %v84_v14, 0.0 }
 0x111   :  { %v86_v16 = vmin.f32 %v85_v15, 6.0 }
 0x113   :  { %v87_v17 = vmul.f32 %v86_v16, %v82_v13 }
 0x115   :  { %v88_v18 = vmul.f32 0.16666667, %v87_v17 }
 0x117   :  { %90 = vst.msk [vmem:[%s161_s5] sm:$0x3] %vm89_vm2, %v88_v18 }

// kernel: se_inverted_bottleneck.5
= control target key start
LH: loop header
LB: loop body
LE: loop exit
PB: predicated region body
PF: predicated region fallthrough
CT: control target
= control target key end

     0   :  { %s738_s15 = smov 0   ;;  %s954_s0 = inlined_call_operand.vmem [shape: f32[2,10,10,32], index: 0, kind: input, shape index: {}]   ;;  %s955_s1 = inlined_call_operand.vmem [shape: f32[3,3,32], index: 1, kind: input, shape index: {}]   ;;  %s956_s2 = inlined_call_operand.vmem [shape: f32[1,32], index: 2, kind: input, shape index: {}]   ;;  %s957_s3 = inlined_call_operand.vmem [shape: f32[2,8,8,32], index: 3, kind: output, shape index: {0}]   ;;  %s958_s4 = inlined_call_operand.vmem [shape: f32[2,1,32], index: 4, kind: output, shape index: {1}]  }
   0x1 LB: > { %s617_s16 = sadd.s32 4294967295, %s710_s15   ;;  %p621_p0 = scmp.ge.s32.totalorder %s710_s15, 1  ;;  %s710_s15 = sphi %s738_s15, %s15_s15  }
   0x2   : > { %p165_p1 = scmp.lt.s32.totalorder %s710_s15, 3 }
   0x4   : > { %p166_p2 = pnand %p621_p0, %p165_p1 }
   0x5   : > { %p194_p3 = scmp.lt.s32.totalorder (!%p166_p2), %s617_s16, 1 }
   0x6   : > { %169 = sbr.rel (%p166_p2) target bundleno = 100 (0x64), region = 32 }
   0xb   : > { %s960_s16 = smov (!%p194_p3, %s617_s16), 1  ;;  %v751_v0 = vld [vmem:[%s955_s1] ss:$0 sm:$0xff]  ;;  %v756_v1 = vld [vmem:[%s955_s1 + $0x1] ss:$0 sm:$0xff]  ;;  %vm497_vm0 = vcmask 261120  }
   0xc   : > { %v761_v2 = vld [vmem:[%s955_s1 + $0x2] ss:$0 sm:$0xff]  ;;  %v766_v3 = vld [vmem:[%s955_s1 + $0x4] ss:$0 sm:$0xff]  ;;  %v771_v4 = vld [vmem:[%s955_s1 + $0x5] ss:$0 sm:$0xff]  ;;  %s206_s23 = scalar_lea.vmem %s958_s4, %s960_s16 }
   0xd   : > { %s682_s27 = smul.u32 160, %s960_s16  ;;  %v777_v5 = vld [vmem:[%s955_s1 + $0x6] ss:$0 sm:$0xff]  ;;  %v782_v6 = vld [vmem:[%s955_s1 + $0x8] ss:$0 sm:$0xff]  ;;  %s681_s17 = sshll.u32 %s960_s16, 6 }
   0xe   : > { %v792_v7 = vld [vmem:[%s955_s1 + $0x9] ss:$0 sm:$0xff]  ;;  %v797_v8 = vld [vmem:[%s955_s1 + $0xa] ss:$0 sm:$0xff]  ;;  %s891_s20 = scalar_lea.vmem %s957_s3, %s681_s17  ;;  %vm535_vm2 = vcmask 253952  }
   0xf   : > { %s787_s8 = scalar_lea.vmem %s954_s0, %s682_s27 }
  0x10   : > { %v207_v9 = vld [vmem:[%s787_s8] sm:$0xff]  ;;  %v625_v15 = vld [vmem:[%s787_s8 + $0x10] sm:$0xff] }
  0x11   : > { %v233_v10 = vld [vmem:[%s787_s8 + $0x1] sm:$0xff]  ;;  %v217_v12 = vmul.f32 %v751_v0, %v207_v9  ;;  %v634_v16 = vld [vmem:[%s787_s8 + $0x11] sm:$0xff]  ;;  %v297_v18 = vmul.f32 %v766_v3, %v625_v15  ;;  %v218_v22 = vmul.f32 %v751_v0, %v625_v15 }
  0x12   : > { %v259_v11 = vld [vmem:[%s787_s8 + $0x2] sm:$0xff]  ;;  %v243_v13 = vmul.f32 %v756_v1, %v233_v10  ;;  %v643_v17 = vld [vmem:[%s787_s8 + $0x12] sm:$0xff]  ;;  %v323_v19 = vmul.f32 %v771_v4, %v634_v16  ;;  %v244_v29 = vmul.f32 %v756_v1, %v634_v16 }
  0x13   : > { %v269_v14 = vmul.f32 %v761_v2, %v259_v11  ;;  %v652_v20 = vld [vmem:[%s787_s8 + $0x20] sm:$0xff]  ;;  %v349_v24 = vmul.f32 %v777_v5, %v643_v17  ;;  %v270_v30 = vmul.f32 %v761_v2, %v643_v17  ;;  %v653_v32 = vld [vmem:[%s787_s8 + $0x30] sm:$0xff] }
  0x14   : > { %v661_v21 = vld [vmem:[%s787_s8 + $0x21] sm:$0xff]  ;;  %v251_v23 = vadd.f32 %v243_v13, %v217_v12  ;;  %v377_v25 = vmul.f32 %v782_v6, %v652_v20  ;;  %v298_v31 = vmul.f32 %v766_v3, %v652_v20  ;;  %v378_v36 = vmul.f32 %v782_v6, %v653_v32  ;;  %v662_v37 = vld [vmem:[%s787_s8 + $0x31] sm:$0xff] }
  0x15   : > { %v403_v26 = vmul.f32 %v792_v7, %v661_v21  ;;  %v670_v27 = vld [vmem:[%s787_s8 + $0x22] sm:$0xff]  ;;  %v324_v34 = vmul.f32 %v771_v4, %v661_v21  ;;  %v252_v38 = vadd.f32 %v244_v29, %v218_v22  ;;  %v404_v39 = vmul.f32 %v792_v7, %v662_v37  ;;  %v671_v40 = vld [vmem:[%s787_s8 + $0x32] sm:$0xff] }
  0x16   : > { %v818_v28 = vmul.f32 %v797_v8, %v670_v27  ;;  %v277_v33 = vadd.f32 %v269_v14, %v251_v23  ;;  %v350_v35 = vmul.f32 %v777_v5, %v670_v27  ;;  %v219_v41 = vmul.f32 %v751_v0, %v652_v20  ;;  %v654_v51 = vld [vmem:[%s787_s8 + $0x40] sm:$0xff]  ;;  %v655_v15 = vld [vmem:[%s787_s8 + $0x50] sm:$0xff] }
  0x17   : > { %v245_v42 = vmul.f32 %v756_v1, %v661_v21  ;;  %v430_v44 = vmul.f32 %v797_v8, %v671_v40  ;;  %v271_v45 = vmul.f32 %v761_v2, %v670_v27  ;;  %v299_v46 = vmul.f32 %v766_v3, %v653_v32  ;;  %v663_v52 = vld [vmem:[%s787_s8 + $0x41] sm:$0xff]  ;;  %v664_v16 = vld [vmem:[%s787_s8 + $0x51] sm:$0xff] }
  0x18   : > { %v305_v43 = vadd.f32 %v297_v18, %v277_v33  ;;  %v278_v47 = vadd.f32 %v270_v30, %v252_v38  ;;  %v325_v49 = vmul.f32 %v771_v4, %v662_v37  ;;  %v351_v50 = vmul.f32 %v777_v5, %v671_v40  ;;  %v672_v59 = vld [vmem:[%s787_s8 + $0x42] sm:$0xff]  ;;  %v859_v30 = vld [vmem:[%s956_s2] ss:$0 sm:$0xff] }
  0x19   : > { %v253_v48 = vadd.f32 %v245_v42, %v219_v41  ;;  %v379_v54 = vmul.f32 %v782_v6, %v654_v51  ;;  %v405_v55 = vmul.f32 %v792_v7, %v663_v52  ;;  %v220_v56 = vmul.f32 %v751_v0, %v653_v32  ;;  %v656_v38 = vld [vmem:[%s787_s8 + $0x60] sm:$0xff] }
  0x1a   : > { %v331_v53 = vadd.f32 %v323_v19, %v305_v43  ;;  %v306_v57 = vadd.f32 %v298_v31, %v278_v47  ;;  %v246_v60 = vmul.f32 %v756_v1, %v662_v37  ;;  %v272_v61 = vmul.f32 %v761_v2, %v671_v40 }
  0x1b   : > { %v279_v58 = vadd.f32 %v271_v45, %v253_v48  ;;  %v431_v63 = vmul.f32 %v797_v8, %v672_v59  ;;  %v300_v9 = vmul.f32 %v766_v3, %v654_v51  ;;  %v326_v10 = vmul.f32 %v771_v4, %v663_v52  ;;  %v665_v48 = vld [vmem:[%s787_s8 + $0x61] sm:$0xff] }
  0x1c   : > { %v357_v62 = vadd.f32 %v349_v24, %v331_v53  ;;  %v332_v11 = vadd.f32 %v324_v34, %v306_v57  ;;  %v254_v13 = vadd.f32 %v246_v60, %v220_v56  ;;  %v352_v14 = vmul.f32 %v777_v5, %v672_v59  ;;  %v673_v24 = vld [vmem:[%s787_s8 + $0x52] sm:$0xff] }
  0x1d   : > { %v307_v12 = vadd.f32 %v299_v46, %v279_v58  ;;  %v380_v18 = vmul.f32 %v782_v6, %v655_v15  ;;  %v406_v19 = vmul.f32 %v792_v7, %v664_v16  ;;  %v221_v20 = vmul.f32 %v751_v0, %v654_v51 }
  0x1e   : > { %v385_v17 = vadd.f32 %v377_v25, %v357_v62  ;;  %v358_v21 = vadd.f32 %v350_v35, %v332_v11  ;;  %v280_v23 = vadd.f32 %v272_v61, %v254_v13  ;;  %v247_v27 = vmul.f32 %v756_v1, %v663_v52 }
  0x1f   : > { %v333_v22 = vadd.f32 %v325_v49, %v307_v12  ;;  %v432_v25 = vmul.f32 %v797_v8, %v673_v24  ;;  %v273_v31 = vmul.f32 %v761_v2, %v672_v59  ;;  %v301_v32 = vmul.f32 %v766_v3, %v655_v15 }
  0x20   : > { %v411_v29 = vadd.f32 %v403_v26, %v385_v17  ;;  %v386_v33 = vadd.f32 %v378_v36, %v358_v21  ;;  %v308_v35 = vadd.f32 %v300_v9, %v280_v23  ;;  %v255_v37 = vadd.f32 %v247_v27, %v221_v20  ;;  %v674_v9 = vld [vmem:[%s787_s8 + $0x62] sm:$0xff]  ;;  %v666_v27 = vld [vmem:[%s787_s8 + $0x71] sm:$0xff] }
  0x21   : > { %v359_v34 = vadd.f32 %v351_v50, %v333_v22  ;;  %v327_v26 = vmul.f32 %v771_v4, %v664_v16  ;;  %v353_v41 = vmul.f32 %v777_v5, %v673_v24  ;;  %v381_v42 = vmul.f32 %v782_v6, %v656_v38 }
  0x22   : > { %v437_v40 = vadd.f32 %v818_v28, %v411_v29  ;;  %v412_v43 = vadd.f32 %v404_v39, %v386_v33  ;;  %v334_v46 = vadd.f32 %v326_v10, %v308_v35  ;;  %v281_v47 = vadd.f32 %v273_v31, %v255_v37 }
  0x23   : > { %v387_v45 = vadd.f32 %v379_v54, %v359_v34  ;;  %v407_v36 = vmul.f32 %v792_v7, %v665_v48  ;;  %v222_v50 = vmul.f32 %v751_v0, %v655_v15  ;;  %v248_v28 = vmul.f32 %v756_v1, %v664_v16  ;;  %v657_v16 = vld [vmem:[%s787_s8 + $0x70] sm:$0xff] }
  0x24   : > { %v449_v49 = vadd.f32 %v859_v30, %v437_v40  ;;  %v438_v51 = vadd.f32 %v430_v44, %v412_v43  ;;  %v360_v53 = vadd.f32 %v352_v14, %v334_v46  ;;  %v309_v56 = vadd.f32 %v301_v32, %v281_v47  ;;  %v675_v46 = vld [vmem:[%s787_s8 + $0x72] sm:$0xff] }
  0x25   : > { %v413_v52 = vadd.f32 %v405_v55, %v387_v45  ;;  %v256_v58 = vadd.f32 %v248_v28, %v222_v50  ;;  %v274_v39 = vmul.f32 %v761_v2, %v673_v24  ;;  %v302_v54 = vmul.f32 %v766_v3, %v656_v38 }
  0x26   : > { %v457_v57 = vadd.f32 3.0, %v449_v49  ;;  %v450_v59 = vadd.f32 %v859_v30, %v438_v51  ;;  %v388_v61 = vadd.f32 %v380_v18, %v360_v53  ;;  %v335_v62 = vadd.f32 %v327_v26, %v309_v56 }
  0x27   : > { %v439_v60 = vadd.f32 %v431_v63, %v413_v52  ;;  %v433_v44 = vmul.f32 %v797_v8, %v674_v9  ;;  %v282_v55 = vadd.f32 %v274_v39, %v256_v58  ;;  %v328_v11 = vmul.f32 %v771_v4, %v665_v48 }
  0x28   : > { %v465_v10 = vmax.f32 %v457_v57, 0.0  ;;  %v458_v12 = vadd.f32 3.0, %v450_v59  ;;  %v414_v14 = vadd.f32 %v406_v19, %v388_v61  ;;  %v361_v15 = vadd.f32 %v353_v41, %v335_v62 }
  0x29   : > { %v451_v13 = vadd.f32 %v859_v30, %v439_v60  ;;  %v310_v20 = vadd.f32 %v302_v54, %v282_v55  ;;  %v354_v63 = vmul.f32 %v777_v5, %v674_v9  ;;  %v382_v18 = vmul.f32 %v782_v6, %v657_v16 }
  0x2a   : > { %v473_v17 = vmin.f32 %v465_v10, 6.0  ;;  %v466_v21 = vmax.f32 %v458_v12, 0.0  ;;  %v440_v23 = vadd.f32 %v432_v25, %v414_v14  ;;  %v389_v24 = vadd.f32 %v381_v42, %v361_v15  ;;  %v658_v10 = vld [vmem:[%s787_s8 + $0x80] sm:$0xff] }
  0x2b   : > { %v459_v22 = vadd.f32 3.0, %v451_v13  ;;  %v336_v31 = vadd.f32 %v328_v11, %v310_v20  ;;  %v408_v32 = vmul.f32 %v792_v7, %v666_v27  ;;  %v223_v19 = vmul.f32 %v751_v0, %v656_v38  ;;  %v667_v14 = vld [vmem:[%s787_s8 + $0x81] sm:$0xff] }
  0x2c   : > { %v481_v29 = vmul.f32 %v473_v17, %v449_v49  ;;  %v474_v33 = vmin.f32 %v466_v21, 6.0  ;;  %v452_v35 = vadd.f32 %v859_v30, %v440_v23  ;;  %v415_v25 = vadd.f32 %v407_v36, %v389_v24  ;;  %v676_v23 = vld [vmem:[%s787_s8 + $0x82] sm:$0xff] }
  0x2d   : > { %v467_v34 = vmax.f32 %v459_v22, 0.0  ;;  %v362_v40 = vadd.f32 %v354_v63, %v336_v31  ;;  %v249_v26 = vmul.f32 %v756_v1, %v665_v48  ;;  %v275_v41 = vmul.f32 %v761_v2, %v674_v9 }
  0x2e   : > { %v489_v37 = vmul.f32 0.16666667, %v481_v29  ;;  %v482_v42 = vmul.f32 %v474_v33, %v450_v59  ;;  %v460_v38 = vadd.f32 3.0, %v452_v35  ;;  %v441_v45 = vadd.f32 %v433_v44, %v415_v25 }
  0x2f   : > { %v475_v43 = vmin.f32 %v467_v34, 6.0  ;;  %v390_v47 = vadd.f32 %v382_v18, %v362_v40  ;;  %v434_v49 = vmul.f32 %v797_v8, %v675_v46  ;;  %v257_v50 = vadd.f32 %v249_v26, %v223_v19 }
  0x30   : > { %498 = vst.msk [vmem:[%s891_s20] sm:$0xff] %vm497_vm0, %v489_v37  ;;  %v303_v36 = vmul.f32 %v766_v3, %v657_v16  ;;  %v490_v28 = vmul.f32 0.16666667, %v482_v42  ;;  %v468_v48 = vmax.f32 %v460_v38, 0.0  ;;  %v453_v52 = vadd.f32 %v859_v30, %v441_v45 }
  0x31   : > { %v483_v51 = vmul.f32 %v475_v43, %v451_v13  ;;  %v416_v53 = vadd.f32 %v408_v32, %v390_v47  ;;  %v283_v56 = vadd.f32 %v275_v41, %v257_v50  ;;  %v329_v57 = vmul.f32 %v771_v4, %v666_v27  ;;  %v668_v41 = vld [vmem:[%s787_s8 + $0x91] sm:$0xff] }
  0x32   : > { %499 = vst.msk [vmem:[%s891_s20 + $0x8] sm:$0xff] %vm497_vm0, %v490_v28  ;;  %v476_v39 = vmin.f32 %v468_v48, 6.0  ;;  %v461_v54 = vadd.f32 3.0, %v453_v52  ;;  %v355_v61 = vmul.f32 %v777_v5, %v675_v46  ;;  %v383_v11 = vmul.f32 %v782_v6, %v658_v10 }
  0x33   : > { %v491_v58 = vmul.f32 0.16666667, %v483_v51  ;;  %v442_v59 = vadd.f32 %v434_v49, %v416_v53  ;;  %v311_v60 = vadd.f32 %v303_v36, %v283_v56  ;;  %v224_v15 = vmul.f32 %v751_v0, %v657_v16 }
  0x34   : > { %v484_v62 = vmul.f32 %v476_v39, %v452_v35  ;;  %v469_v9 = vmax.f32 %v461_v54, 0.0  ;;  %v250_v17 = vmul.f32 %v756_v1, %v666_v27  ;;  %v409_v18 = vmul.f32 %v792_v7, %v667_v14  ;;  %v659_v35 = vld [vmem:[%s787_s8 + $0x90] sm:$0xff] }
  0x35   : > { %500 = vst.msk [vmem:[%s891_s20 + $0x10] sm:$0xff] %vm497_vm0, %v491_v58  ;;  %v454_v44 = vadd.f32 %v859_v30, %v442_v59  ;;  %v337_v55 = vadd.f32 %v329_v57, %v311_v60  ;;  %v276_v21 = vmul.f32 %v761_v2, %v675_v46  ;;  %v304_v29 = vmul.f32 %v766_v3, %v658_v10  ;;  %v677_v46 = vld [vmem:[%s787_s8 + $0x92] sm:$0xff] }
  0x36   : > { %v492_v12 = vmul.f32 0.16666667, %v484_v62  ;;  %v477_v13 = vmin.f32 %v469_v9, 6.0  ;;  %v258_v24 = vadd.f32 %v250_v17, %v224_v15  ;;  %v506_v31 = vsel %vm497_vm0, %v489_v37, 0.0 }
  0x37   : > { %v462_v20 = vadd.f32 3.0, %v454_v44  ;;  %v363_v63 = vadd.f32 %v355_v61, %v337_v55  ;;  %v435_v16 = vmul.f32 %v797_v8, %v676_v23  ;;  %v507_v27 = vsel %vm497_vm0, %v490_v28, 0.0 }
  0x38   : > { %501 = vst.msk [vmem:[%s891_s20 + $0x18] sm:$0xff] %vm497_vm0, %v492_v12  ;;  %v485_v22 = vmul.f32 %v477_v13, %v453_v52  ;;  %v284_v2 = vadd.f32 %v276_v21, %v258_v24  ;;  %v330_v19 = vmul.f32 %v771_v4, %v667_v14  ;;  %v356_v25 = vmul.f32 %v777_v5, %v676_v23 }
  0x39   : > { %v470_v0 = vmax.f32 %v462_v20, 0.0  ;;  %v391_v1 = vadd.f32 %v383_v11, %v363_v63  ;;  %v508_v37 = vadd.f32 %v507_v27, %v506_v31  ;;  %v509_v42 = vsel %vm497_vm0, %v491_v58, 0.0 }
  0x3a   : > { %v493_v32 = vmul.f32 0.16666667, %v485_v22  ;;  %v312_v3 = vadd.f32 %v304_v29, %v284_v2  ;;  %v384_v38 = vmul.f32 %v782_v6, %v659_v35  ;;  %v410_v49 = vmul.f32 %v792_v7, %v668_v41 }
  0x3b   : > { %v478_v33 = vmin.f32 %v470_v0, 6.0  ;;  %v417_v34 = vadd.f32 %v409_v18, %v391_v1  ;;  %v510_v50 = vadd.f32 %v509_v42, %v508_v37  ;;  %v511_v36 = vsel %vm497_vm0, %v492_v12, 0.0 }
  0x3c   : > { %502 = vst.msk [vmem:[%s891_s20 + $0x20] sm:$0xff] %vm497_vm0, %v493_v32  ;;  %v338_v43 = vadd.f32 %v330_v19, %v312_v3  ;;  %v436_v51 = vmul.f32 %v797_v8, %v677_v46  ;;  %v513_v56 = vsel %vm497_vm0, %v493_v32, 0.0  ;;  %v712_v39 = vmov 64.0  }
  0x3d   : > { %v486_v40 = vmul.f32 %v478_v33, %v454_v44  ;;  %v443_v26 = vadd.f32 %v435_v16, %v417_v34  ;;  %v512_v6 = vadd.f32 %v511_v36, %v510_v50  ;;  %702 = vrcp.f32 %v712_v39 }
  0x3e   : > { %v364_v47 = vadd.f32 %v356_v25, %v338_v43 }
  0x3f   : > { %v494_v4 = vmul.f32 0.16666667, %v486_v40  ;;  %v455_v45 = vadd.f32 %v859_v30, %v443_v26  ;;  %v514_v54 = vadd.f32 %v513_v56, %v512_v6 }
  0x40   : > { %v392_v28 = vadd.f32 %v384_v38, %v364_v47 }
  0x41   : > { %503 = vst.msk [vmem:[%s891_s20 + $0x28] sm:$0xff] %vm497_vm0, %v494_v4  ;;  %v463_v5 = vadd.f32 3.0, %v455_v45  ;;  %v515_v60 = vsel %vm497_vm0, %v494_v4, 0.0 }
  0x42   : > { %v418_v52 = vadd.f32 %v410_v49, %v392_v28  ;;  %v516_v9 = vadd.f32 %v515_v60, %v514_v54 }
  0x43   : > { %v471_v48 = vmax.f32 %v463_v5, 0.0  ;;  %v703_v62 = vpop.eup %702 }
  0x44   : > { %v444_v57 = vadd.f32 %v436_v51, %v418_v52  ;;  %v528_v11 = vmul.f32 64.0, %v703_v62  ;;  %vm532_vm1 = vweird.f32 %v703_v62 }
  0x45   : > { %v479_v53 = vmin.f32 %v471_v48, 6.0 }
  0x46   : > { %v456_v7 = vadd.f32 %v859_v30, %v444_v57  ;;  %v529_v14 = vsub.f32 1.0, %v528_v11 }
  0x47   : > { %v487_v58 = vmul.f32 %v479_v53, %v455_v45 }
  0x48   : > { %v464_v61 = vadd.f32 3.0, %v456_v7  ;;  %v530_v20 = vmul.f32 %v703_v62, %v529_v14 }
  0x49   : > { %v495_v59 = vmul.f32 0.16666667, %v487_v58 }
  0x4a   : > { %v472_v8 = vmax.f32 %v464_v61, 0.0  ;;  %v531_v21 = vadd.f32 %v703_v62, %v530_v20 }
  0x4b   : > { %504 = vst.msk [vmem:[%s891_s20 + $0x30] sm:$0xff] %vm497_vm0, %v495_v59  ;;  %v517_v10 = vsel %vm497_vm0, %v495_v59, 0.0 }
  0x4c   : > { %v480_v44 = vmin.f32 %v472_v8, 6.0  ;;  %v518_v12 = vadd.f32 %v517_v10, %v516_v9  ;;  %v533_v24 = vsel %vm532_vm1, %v703_v62, %v531_v21 }
  0x4e   : > { %v488_v55 = vmul.f32 %v480_v44, %v456_v7 }
  0x50   : > { %v496_v13 = vmul.f32 0.16666667, %v488_v55 }
  0x52   : > { %505 = vst.msk [vmem:[%s891_s20 + $0x38] sm:$0xff] %vm497_vm0, %v496_v13  ;;  %v519_v30 = vsel %vm497_vm0, %v496_v13, 0.0 }
  0x53   : > { %v520_v15 = vadd.f32 %v519_v30, %v518_v12 }
  0x55   : > { %v521_v17 = vrot.slane %v520_v15, 4 }
  0x57   : > { %v522_v63 = vadd.f32 %v521_v17, %v520_v15 }
  0x59   : > { %v523_v18 = vrot.slane %v522_v63, 2 }
  0x5b   : > { %v524_v22 = vadd.f32 %v523_v18, %v522_v63 }
  0x5d   : > { %v525_v23 = vrot.slane %v524_v22, 1 }
  0x5f   : > { %v526_v29 = vadd.f32 %v525_v23, %v524_v22 }
  0x61   : > { %v534_v31 = vmul.f32 %v533_v24, %v526_v29 }
  0x63   : > { %536 = vst.msk [vmem:[%s206_s23] sm:$0x1] %vm535_vm2, %v534_v31 }
  0x64 PF: > { %s15_s15 = sadd.s32 1, %s710_s15  }
  0x65   : > { %p12_p4 = scmp.ge.s32.totalorder %s15_s15, 4  }
  0x67   :  { %14 = sbr.rel (!%p12_p4) target bundleno = 1 (0x1), region = 78 }

// kernel: se_inverted_bottleneck.7
= control target key start
LH: loop header
LB: loop body
LE: loop exit
PB: predicated region body
PF: predicated region fallthrough
CT: control target
= control target key end

     0   :  { %12 = vsyncpa [#allocation3], 0  ;;  %s1023_s0 = inlined_call_operand.vmem [shape: f32[2,64,32], index: 0, kind: input, shape index: {}]   ;;  %s1024_s1 = inlined_call_operand.vmem [shape: f32[2,1,32], index: 1, kind: input, shape index: {}]   ;;  %s1025_s2 = inlined_call_operand.vmem [shape: f32[2,64,16], index: 2, kind: input, shape index: {}]   ;;  %s1026_s3 = inlined_call_operand.vmem [shape: f32[32,16], index: 3, kind: input, shape index: {}]   ;;  %s1027_s4 = inlined_call_operand.vmem [shape: f32[1,16], index: 4, kind: input, shape index: {}]   ;;  %s1028_s5 = inlined_call_operand.vmem [shape: f32[16,16], index: 5, kind: input, shape index: {}]   ;;  %s1029_s6 = inlined_call_operand.vmem [shape: f32[1,16], index: 6, kind: input, shape index: {}]   ;;  %s1030_s7 = inlined_call_operand.hbm [shape: f32[2,64,16], index: 7, kind: output, shape index: {}]  }
   0x1   :  { %14 = vsyncpa [#allocation3 + $0x1], 0  ;;  %s829_s24 = smov 0   ;;  %s831_s25 = smov 0  }
   0x2   :  { %s833_s26 = smov 0   ;;  %s835_s27 = smov 0  }
   0x3 LB: > { %s850_s28 = sadd.s32 4294967295, %s785_s27   ;;  %s640_s29 = sadd.s32 4294967294, %s785_s27   ;;  %s785_s27 = sphi %s835_s27, %s1036_s27   ;;  %s781_s26 = sphi %s833_s26, %s1035_s26   ;;  %s777_s25 = sphi %s831_s25, %s1034_s25   ;;  %s773_s24 = sphi %s829_s24, %s1033_s24  }
   0x4   : > { %s854_s30 = sadd.s32 1, %s785_s27   ;;  %s189_s8 = sadd.s32 1, %s781_s26 }
   0x5   : > { %s186_s9 = ssub.s32 %s785_s27, %s854_s30  ;;  %p199_p0 = scmp.ne.s32.totalorder %s781_s26, %s777_s25 }
   0x6   : > { %p187_p1 = scmp.eq.s32.totalorder %s186_s9, 0  ;;  %p200_p2 = scmp.eq.s32.totalorder %s850_s28, 1 }
   0x7   : > { %p205_p3 = scmp.ne.s32.totalorder %s777_s25, %s773_s24  ;;  %p206_p4 = scmp.eq.s32.totalorder %s640_s29, 1 }
   0x8   : > { %s865_s10 = scalar_select %p187_p1, %s781_s26, %s189_s8  }
   0x9   : > { %p867_p5 = por %p200_p2, %p199_p0  ;;  %p871_p6 = por %p206_p4, %p205_p3 }
   0xa   : > { %p643_p7 = scmp.ge.s32.totalorder %s785_s27, 1  ;;  %p258_p8 = scmp.lt.s32.totalorder %s785_s27, 3 }
   0xc   : > { %p259_p9 = pnand %p643_p7, %p258_p8 }
   0xd   : > { %p298_p10 = scmp.lt.s32.totalorder (!%p259_p9), %s850_s28, 1  ;;  %s672_s15 = sshll.u32 (!%p259_p9), %s850_s28, 6 }
   0xe   : > { %262 = sbr.rel (%p259_p9) target bundleno = 202 (0xca), region = 48  ;;  %s743_s9 = scalar_lea.hbm (!%p259_p9), %s1030_s7, 128 }
  0x13   : > { %v334_v0 = vld [vmem:[%s1026_s3 + $0x18] sm:$0xff]  ;;  %v454_v1 = vld [vmem:[%s1028_s5 + $0x8] sm:$0xff]  ;;  %v333_v2 = vld [vmem:[%s1026_s3 + $0x10] sm:$0xff]  ;;  %s299_s23 = scalar_select %p298_p10, %s850_s28, 1  ;;  %vm459_vm0 = vcmask 130048   ;;  %vm339_vm1 = vcmask 261120  }
  0x14   : > { %376 = vmatpush.msra.mxu0 %v334_v0  ;;  %673 = vmatpush.msra.mxu2 %v334_v0  ;;  %v453_v3 = vld [vmem:[%s1028_s5] sm:$0xff]  ;;  %v332_v4 = vld [vmem:[%s1026_s3 + $0x8] sm:$0xff] }
  0x15   : > { %498 = vmatpush.msra.mxu1 %v454_v1  ;;  %677 = vmatpush.msra.mxu3 %v454_v1  ;;  %s670_s29 = sshll.u32 %s299_s23, 6  ;;  %s305_s13 = scalar_lea.vmem %s1024_s1, %s299_s23  ;;  %v331_v5 = vld [vmem:[%s1026_s3] sm:$0xff] }
  0x16   : > { %377 = vmatpush.msra.mxu0 %v333_v2  ;;  %674 = vmatpush.msra.mxu2 %v333_v2  ;;  %s903_s18 = scalar_lea.vmem %s1023_s0, %s670_s29  ;;  %s908_s21 = scalar_lea.vmem %s1025_s2, %s670_s29  ;;  %v720_v6 = vld [vmem:[%s305_s13] ss:$0 sm:$0xff] }
  0x17   : > { %499 = vmatpush.msra.mxu1 %v453_v3  ;;  %678 = vmatpush.msra.mxu3 %v453_v3  ;;  %v445_v7 = vld [vmem:[%s908_s21] sm:$0xff]  ;;  %v450_v12 = vld [vmem:[%s908_s21 + $0x28] sm:$0xff]  ;;  %v451_v18 = vld [vmem:[%s908_s21 + $0x30] sm:$0xff]  ;;  %s295_s29 = sand.u32 1, %s777_s25  }
  0x18   : > { %378 = vmatpush.msra.mxu0 %v332_v4  ;;  %675 = vmatpush.msra.mxu2 %v332_v4  ;;  %v311_v8 = vld [vmem:[%s903_s18] sm:$0xff]  ;;  %v312_v13 = vld [vmem:[%s903_s18 + $0x8] sm:$0xff]  ;;  %v313_v19 = vld [vmem:[%s903_s18 + $0x10] sm:$0xff]  ;;  %s644_s13 = sshll.u32 %s295_s29, 6  ;;  %s542_s20 = scalar_lea.sflag [#allocation3], %s295_s29 }
  0x19   : > { %v315_v9 = vld [vmem:[%s903_s18 + $0x20] sm:$0xff]  ;;  %657 = vmatmul.msk.f32.vlgmr.msra.gmra.mxu1 %vm459_vm0, %v445_v7  ;;  %v323_v10 = vmul.f32 %v720_v6, %v311_v8  ;;  %v316_v14 = vld [vmem:[%s903_s18 + $0x28] sm:$0xff]  ;;  %662 = vmatmul.msk.f32.vlgmr.msra.gmra.mxu3 %vm459_vm0, %v450_v12  ;;  %v324_v16 = vmul.f32 %v720_v6, %v312_v13  ;;  %v317_v20 = vld [vmem:[%s903_s18 + $0x30] sm:$0xff]  ;;  %v325_v22 = vmul.f32 %v720_v6, %v313_v19  ;;  %s959_s14 = scalar_lea.vmem [#allocation2], %s644_s13 }
  0x1a   : > { %379 = vmatpush.msra.mxu0 %v331_v5  ;;  %v327_v11 = vmul.f32 %v720_v6, %v315_v9  ;;  %676 = vmatpush.msra.mxu2 %v331_v5  ;;  %v446_v15 = vld [vmem:[%s908_s21 + $0x8] sm:$0xff]  ;;  %v328_v17 = vmul.f32 %v720_v6, %v316_v14  ;;  %v447_v21 = vld [vmem:[%s908_s21 + $0x10] sm:$0xff]  ;;  %v329_v23 = vmul.f32 %v720_v6, %v317_v20  ;;  %v452_v24 = vld [vmem:[%s908_s21 + $0x38] sm:$0xff]  ;;  %s554_s28 = sshll.u32 %s959_s14, 4  ;;  %s555_s28 = int_to_ptr.vmem [resolvable:$true] %s554_s28 }
  0x1b   : > { %649 = vmatmul.msk.f32.vlgmr.msra.gmra.mxu0 %vm339_vm1, %v323_v10  ;;  %v314_v25 = vld [vmem:[%s903_s18 + $0x18] sm:$0xff]  ;;  %v449_v30 = vld [vmem:[%s908_s21 + $0x20] sm:$0xff] }
  0x1c   : > { %653 = vmatmul.msk.f32.vlgmr.msra.gmra.mxu2 %vm339_vm1, %v327_v11  ;;  %v318_v26 = vld [vmem:[%s903_s18 + $0x38] sm:$0xff]  ;;  %v326_v28 = vmul.f32 %v720_v6, %v314_v25  ;;  %v945_v31 = vld [vmem:[%s1027_s4] ss:$0 sm:$0xff]  ;;  %s553_s18 = scalar_lea.hbm %s1030_s7, %s672_s15 }
  0x1d   : > { %v448_v27 = vld [vmem:[%s908_s21 + $0x18] sm:$0xff]  ;;  %v330_v29 = vmul.f32 %v720_v6, %v318_v26  ;;  %v952_v39 = vld [vmem:[%s1029_s6] ss:$0 sm:$0xff]  ;;  %s556_s19 = sshll.u32 %s553_s18, 4  ;;  %s557_s19 = int_to_ptr.hbm [resolvable:$true] %s556_s19 }
  0x1e   : > { %s737_s21 = sshra.s32 %s557_s19, 4  ;;  %s738_s21 = int_to_ptr.hbm [resolvable:$true] %s737_s21 }
  0x1f   : > { %s739_s22 = scalar_lea.hbm %s738_s21, 64  ;;  %p744_p0 = scmp.lt.s32.totalorder %s738_s21, %s1030_s7 }
  0x20   : > { %p740_p11 = scmp.ne.s32.totalorder %s738_s21, %s739_s22  ;;  %p745_p1 = scmp.lt.s32.totalorder %s743_s9, %s739_s22 }
  0x21   : > { %658 = vmatmul.msk.f32.gmra.mxu1 %vm459_vm0, %v446_v15  ;;  %663 = vmatmul.msk.f32.gmra.mxu3 %vm459_vm0, %v451_v18 }
  0x22   : > { %p741_p12 = pnand %p740_p11, %p867_p5  ;;  %p746_p2 = por %p745_p1, %p744_p0 }
  0x23   : > { %650 = vmatmul.msk.f32.gmra.mxu0 %vm339_vm1, %v324_v16 }
  0x24   : > { %654 = vmatmul.msk.f32.gmra.mxu2 %vm339_vm1, %v328_v17  ;;  %p742_p13 = pneg %p741_p12 }
  0x26   : > { %p747_p3 = pnand %p746_p2, %p742_p13 }
  0x29   : > { %659 = vmatmul.msk.f32.gmra.mxu1 %vm459_vm0, %v447_v21  ;;  %664 = vmatmul.msk.f32.gmra.mxu3 %vm459_vm0, %v452_v24 }
  0x2b   : > { %651 = vmatmul.msk.f32.gmra.mxu0 %vm339_vm1, %v325_v22 }
  0x2c   : > { %655 = vmatmul.msk.f32.gmra.mxu2 %vm339_vm1, %v329_v23 }
  0x31   : > { %660 = vmatmul.msk.f32.gmra.mxu1 %vm459_vm0, %v448_v27 }
  0x33   : > { %652 = vmatmul.msk.f32.gmra.mxu0 %vm339_vm1, %v326_v28 }
  0x34   : > { %656 = vmatmul.msk.f32.gmra.mxu2 %vm339_vm1, %v330_v29 }
  0x39   : > { %661 = vmatmul.msk.f32.gmra.mxu1 %vm459_vm0, %v449_v30 }
  0x96   : > { %v501_v32 = vpop.f32.mrf.mxu1 }
  0x97   : > { %v502_v45 = vadd.f32 %v952_v39, %v501_v32 }
  0x98   : > { %v381_v33 = vpop.f32.mrf.mxu0 }
  0x99   : > { %v382_v34 = vadd.f32 %v945_v31, %v381_v33 }
  0x9b   : > { %v405_v35 = vadd.f32 3.0, %v382_v34 }
  0x9c   : > { %v516_v56 = vpop.f32.mrf.mxu3 }
  0x9d   : > { %v413_v36 = vmax.f32 %v405_v35, 0.0  ;;  %v517_v10 = vadd.f32 %v952_v39, %v516_v56 }
  0x9e   : > { %v504_v37 = vpop.f32.mrf.mxu1 }
  0x9f   : > { %v393_v38 = vpop.f32.mrf.mxu2  ;;  %v421_v40 = vmin.f32 %v413_v36, 6.0  ;;  %v505_v61 = vadd.f32 %v952_v39, %v504_v37 }
  0xa0   : > { %v384_v41 = vpop.f32.mrf.mxu0  ;;  %v394_v44 = vadd.f32 %v945_v31, %v393_v38 }
  0xa1   : > { %v429_v42 = vmul.f32 %v421_v40, %v382_v34  ;;  %v385_v43 = vadd.f32 %v945_v31, %v384_v41 }
  0xa2   : > { %v409_v50 = vadd.f32 3.0, %v394_v44 }
  0xa3   : > { %v437_v46 = vmul.f32 0.16666667, %v429_v42  ;;  %v406_v47 = vadd.f32 3.0, %v385_v43 }
  0xa4   : > { %v417_v60 = vmax.f32 %v409_v50, 0.0  ;;  %v519_v18 = vpop.f32.mrf.mxu3 }
  0xa5   : > { %v525_v48 = vadd.f32 %v502_v45, %v437_v46  ;;  %v414_v49 = vmax.f32 %v406_v47, 0.0  ;;  %v520_v29 = vadd.f32 %v952_v39, %v519_v18 }
  0xa6   : > { %v507_v51 = vpop.f32.mrf.mxu1  ;;  %v425_v4 = vmin.f32 %v417_v60, 6.0 }
  0xa7   : > { %v396_v52 = vpop.f32.mrf.mxu2  ;;  %533 = vst.msk [vmem:[%s959_s14] sm:$0xff] %vm459_vm0, %v525_v48  ;;  %v422_v53 = vmin.f32 %v414_v49, 6.0  ;;  %v508_v17 = vadd.f32 %v952_v39, %v507_v51 }
  0xa8   : > { %v397_v54 = vadd.f32 %v945_v31, %v396_v52  ;;  %v387_v55 = vpop.f32.mrf.mxu0  ;;  %v433_v16 = vmul.f32 %v425_v4, %v394_v44 }
  0xa9   : > { %v430_v57 = vmul.f32 %v422_v53, %v385_v43  ;;  %v388_v59 = vadd.f32 %v945_v31, %v387_v55 }
  0xaa   : > { %v410_v58 = vadd.f32 3.0, %v397_v54  ;;  %v441_v26 = vmul.f32 0.16666667, %v433_v16 }
  0xab   : > { %v438_v62 = vmul.f32 0.16666667, %v430_v57  ;;  %v407_v0 = vadd.f32 3.0, %v388_v59 }
  0xac   : > { %v418_v63 = vmax.f32 %v410_v58, 0.0  ;;  %v522_v44 = vpop.f32.mrf.mxu3 }
  0xad   : > { %v526_v1 = vadd.f32 %v505_v61, %v438_v62  ;;  %v415_v3 = vmax.f32 %v407_v0, 0.0  ;;  %v523_v47 = vadd.f32 %v952_v39, %v522_v44 }
  0xae   : > { %v426_v2 = vmin.f32 %v418_v63, 6.0  ;;  %v510_v5 = vpop.f32.mrf.mxu1 }
  0xaf   : > { %v399_v6 = vpop.f32.mrf.mxu2  ;;  %534 = vst.msk [vmem:[%s959_s14 + $0x8] sm:$0xff] %vm459_vm0, %v526_v1  ;;  %v423_v8 = vmin.f32 %v415_v3, 6.0  ;;  %v511_v40 = vadd.f32 %v952_v39, %v510_v5 }
  0xb0   : > { %v434_v7 = vmul.f32 %v426_v2, %v397_v54  ;;  %v400_v9 = vadd.f32 %v945_v31, %v399_v6  ;;  %v390_v11 = vpop.f32.mrf.mxu0 }
  0xb1   : > { %v431_v13 = vmul.f32 %v423_v8, %v388_v59  ;;  %v391_v15 = vadd.f32 %v945_v31, %v390_v11 }
  0xb2   : > { %v442_v12 = vmul.f32 0.16666667, %v434_v7  ;;  %v411_v14 = vadd.f32 3.0, %v400_v9 }
  0xb3   : > { %v439_v19 = vmul.f32 0.16666667, %v431_v13  ;;  %v408_v21 = vadd.f32 3.0, %v391_v15 }
  0xb4   : > { %v419_v20 = vmax.f32 %v411_v14, 0.0  ;;  %v530_v22 = vadd.f32 %v517_v10, %v442_v12 }
  0xb5   : > { %v527_v23 = vadd.f32 %v508_v17, %v439_v19  ;;  %v416_v25 = vmax.f32 %v408_v21, 0.0 }
  0xb6   : > { %v427_v24 = vmin.f32 %v419_v20, 6.0  ;;  %538 = vst.msk [vmem:[%s959_s14 + $0x28] sm:$0xff] %vm459_vm0, %v530_v22  ;;  %v513_v27 = vpop.f32.mrf.mxu1 }
  0xb7   : > { %v402_v28 = vpop.f32.mrf.mxu2  ;;  %535 = vst.msk [vmem:[%s959_s14 + $0x10] sm:$0xff] %vm459_vm0, %v527_v23  ;;  %v424_v32 = vmin.f32 %v416_v25, 6.0  ;;  %v514_v33 = vadd.f32 %v952_v39, %v513_v27 }
  0xb8   : > { %v435_v30 = vmul.f32 %v427_v24, %v400_v9  ;;  %v403_v34 = vadd.f32 %v945_v31, %v402_v28 }
  0xb9   : > { %v432_v36 = vmul.f32 %v424_v32, %v391_v15  ;;  %v529_v37 = vadd.f32 %v514_v33, %v441_v26 }
  0xba   : > { %v443_v35 = vmul.f32 0.16666667, %v435_v30  ;;  %v412_v38 = vadd.f32 3.0, %v403_v34 }
  0xbb   : > { %v440_v41 = vmul.f32 0.16666667, %v432_v36  ;;  %537 = vst.msk [vmem:[%s959_s14 + $0x20] sm:$0xff] %vm459_vm0, %v529_v37 }
  0xbc   : > { %v420_v42 = vmax.f32 %v412_v38, 0.0  ;;  %v531_v43 = vadd.f32 %v520_v29, %v443_v35 }
  0xbd   : > { %v528_v31 = vadd.f32 %v511_v40, %v440_v41 }
  0xbe   : > { %v428_v45 = vmin.f32 %v420_v42, 6.0  ;;  %539 = vst.msk [vmem:[%s959_s14 + $0x30] sm:$0xff] %vm459_vm0, %v531_v43 }
  0xbf   : > { %536 = vst.msk [vmem:[%s959_s14 + $0x18] sm:$0xff] %vm459_vm0, %v528_v31 }
  0xc0   : > { %v436_v46 = vmul.f32 %v428_v45, %v403_v34 }
  0xc2   : > { %v444_v48 = vmul.f32 0.16666667, %v436_v46 }
  0xc4   : > { %v532_v49 = vadd.f32 %v523_v47, %v444_v48 }
  0xc6   : > { %540 = vst.msk [vmem:[%s959_s14 + $0x38] sm:$0xff] %vm459_vm0, %v532_v49 }
  0xc7   : > { %750 = shalt.err (!%p747_p3)
}
  0xc8   : > { %s787_s29 = smov 128   ;;  %s788_s14 = smov 8  }
  0xc9   : > { %679 = dma.vmem_to_hbm [thread:$0]  (%p867_p5), %s555_s28, 1024, %s557_s19, %s542_s20, %s787_s29, %s787_s29, %s788_s14  }
  0xca PF: > { %p685_p4 = scmp.ge.s32.totalorder %s785_s27, 2  ;;  %s571_s16 = sand.u32 1, %s773_s24  }
  0xcb   : > { %s572_s17 = scalar_lea.sflag [#allocation3], %s571_s16 }
  0xcc   : > { %p682_p7 = pnand %p685_p4, %p871_p6 }
  0xce   : > { %p683_p8 = pneg %p682_p7 }
  0xd0   : > { %768 = dma.done.wait (%p683_p8), %s572_s17, 1024  }
  0xd1   : > { %770 = vsyncadd (%p683_p8), %s572_s17, 4294966272  ;;  %p17_p9 = scmp.ge.s32.totalorder %s854_s30, 4   ;;  %s1033_s24 = smov %s777_s25 }
  0xd2   : > { %s1034_s25 = smov %s781_s26  ;;  %s1035_s26 = smov %s865_s10 }
  0xd3   : > { %s1036_s27 = smov %s854_s30  ;;  %19 = sbr.rel (!%p17_p9) target bundleno = 3 (0x3), region = 89 }
  0xd8   :  { %578 = vsyncpa [#allocation3], 1 }
  0xd9   :  { %580 = vsyncpa [#allocation3 + $0x1], 1 }

</bundles_post_ra>
